<compile_context>
chip_gen: v6e
topology: v6e:2x2x1
jax: 0.10.0
libtpu: 0.0.40
codegen_flags: <defaults>
</compile_context>

<pallas_src>
import numpy as np
import jax
import jax.numpy as jnp
from jax import lax
from jax.experimental import pallas as pl
from jax.experimental.pallas import tpu as pltpu


def _round_up(x, m):
    return ((x + m - 1) // m) * m


def _pad_to(x, shape):
    pads = [(0, t - s) for s, t in zip(x.shape, shape)]
    return jnp.pad(x, pads)


def bert_embed_kernel(enc_ref, wattn_ref, pool_ref, wproj_ref, out_ref):
    # enc_ref:   (L, P, H)  bf16   (batch dim squeezed by BlockSpec)
    # wattn_ref: (H, H)     bf16   (= W_attn.T, pre-transposed in wrapper)
    # pool_ref:  (S, P)     bf16
    # wproj_ref: (H, O)     bf16   (= W_proj.T, pre-transposed in wrapper)
    # out_ref:   (S, O)     f32
    L, P, H = enc_ref.shape
    w_attn_t = wattn_ref[...]                               # resident weight tile

    # --- AttnMerge: online softmax over the layer axis, one layer at a time ---
    def layer_step(l, carry):
        m, num, den = carry
        enc_l = enc_ref[l]                                  # (P, H) bf16, per-layer load
        hx = jnp.dot(enc_l, w_attn_t,
                     preferred_element_type=jnp.float32)    # (P, H) f32 on MXU
        m_new = jnp.maximum(m, hx)
        corr = jnp.exp(m - m_new)                           # rescale previous partials
        p = jnp.exp(hx - m_new)
        num = num * corr + p * enc_l.astype(jnp.float32)
        den = den * corr + p
        return m_new, num, den

    init = (jnp.full((P, H), -jnp.inf, jnp.float32),
            jnp.zeros((P, H), jnp.float32),
            jnp.zeros((P, H), jnp.float32))
    _, num, den = lax.fori_loop(0, L, layer_step, init, unroll=True)

    merged = num * pl.reciprocal(den, approx=True)          # (P, H) f32, EUP recip

    # --- BPE -> token mean pooling + masked scatter (dense pooling matmul) ---
    pooled = jnp.dot(pool_ref[...], merged.astype(jnp.bfloat16),
                     preferred_element_type=jnp.float32)    # (S, H) f32

    # --- projection (Linear, bias=False): y = x @ W.T ---
    out = jnp.dot(pooled.astype(jnp.bfloat16), wproj_ref[...],
                  preferred_element_type=jnp.float32)       # (S, O) f32
    out_ref[...] = out.astype(out_ref.dtype)


def bert_embedding_forward(enc, w_attn, pool, w_proj):
    bz, L, P, H = enc.shape
    S = pool.shape[1]
    O = w_proj.shape[0]

    # Lane-dense padding: last dims -> multiples of 128, sublane dims -> 8.
    H_pad = _round_up(H, 128)
    O_pad = _round_up(O, 128)
    P_pad = _round_up(P, 128)
    S_pad = _round_up(S, 8)

    # bf16 MXU operands; weights pre-transposed so no in-kernel transpose.
    # Zero padding is inert: padded hidden cols of enc are 0 and padded weight
    # rows/cols are 0, so padded outputs are exactly 0 and get sliced off.
    enc_p = _pad_to(enc.astype(jnp.bfloat16), (bz, L, P_pad, H_pad))
    w_attn_t = _pad_to(w_attn.T.astype(jnp.bfloat16), (H_pad, H_pad))
    pool_p = _pad_to(pool.astype(jnp.bfloat16), (bz, S_pad, P_pad))
    w_proj_t = _pad_to(w_proj.T.astype(jnp.bfloat16), (H_pad, O_pad))

    out_p = pl.pallas_call(
        bert_embed_kernel,
        out_shape=jax.ShapeDtypeStruct((bz, S_pad, O_pad), jnp.float32),
        grid=(bz,),
        in_specs=[
            pl.BlockSpec((None, L, P_pad, H_pad), lambda b: (b, 0, 0, 0)),
            pl.BlockSpec((H_pad, H_pad), lambda b: (0, 0)),   # resident weight
            pl.BlockSpec((None, S_pad, P_pad), lambda b: (b, 0, 0)),
            pl.BlockSpec((H_pad, O_pad), lambda b: (0, 0)),   # resident weight
        ],
        out_specs=pl.BlockSpec((None, S_pad, O_pad), lambda b: (b, 0, 0)),
        compiler_params=pltpu.CompilerParams(
            dimension_semantics=("parallel",),
            vmem_limit_bytes=48 * 1024 * 1024,
        ),
    )(enc_p, w_attn_t, pool_p, w_proj_t)

    return out_p[:, :S, :O]


def build_pool_matrix(bert_lens, bert_mask):
    """P[b,t,p] = 1/k for the k masked BPE positions assigned (in order) to token t."""
    bz, seq_len = bert_lens.shape
    bpe_len = bert_mask.shape[1]
    P = np.zeros((bz, seq_len, bpe_len), np.float32)
    for b in range(bz):
        pos = np.nonzero(bert_mask[b])[0]
        cur = 0
        for t in range(seq_len):
            k = int(bert_lens[b, t])
            if k > 0:
                P[b, t, pos[cur:cur + k]] = 1.0 / k
                cur += k
        assert cur == len(pos), "bert_mask ones must equal sum(bert_lens) per batch"
    return P


def reference_forward(enc, w_attn, pool, w_proj):
    hx = jnp.einsum('blph,oh->blpo', enc, w_attn)
    alpha = jax.nn.softmax(hx, axis=1)
    merged = jnp.sum(alpha * enc, axis=1)                  # (bz, P, H)
    pooled = jnp.einsum('btp,bph->bth', pool, merged)      # (bz, S, H)
    return jnp.einsum('bth,oh->bto', pooled, w_proj)       # (bz, S, O)


if __name__ == "__main__":
    # Small shapes consistent with the module's forward.
    bz, seq_len, bpe_len = 2, 8, 16
    nb_layers, hidden, proj_dim = 3, 32, 16

    # Deterministic "forward inputs" of BertEmbedding.
    bert_lens = np.array([[2, 1, 3, 1, 2, 1, 0, 0],
                          [1, 2, 2, 1, 1, 1, 1, 0]], dtype=np.int32)   # (bz, seq_len)
    bert_mask = np.zeros((bz, bpe_len), dtype=np.int32)                # (bz, bpe_len)
    for b in range(bz):
        bert_mask[b, : int(bert_lens[b].sum())] = 1

    key = jax.random.PRNGKey(0)
    k_enc, k_attn, k_proj = jax.random.split(key, 3)

    # Synthetic stand-in for the stacked top-k BERT hidden states (TODO above).
    enc = (0.5 * jax.random.normal(
        k_enc, (bz, nb_layers, bpe_len, hidden))).astype(jnp.float32)

    # Deterministic parameters (shapes from __init__: AttnMerge fc + proj Linear).
    w_attn = (0.1 * jax.random.normal(k_attn, (hidden, hidden))).astype(jnp.float32)
    w_proj = (0.1 * jax.random.normal(k_proj, (proj_dim, hidden))).astype(jnp.float32)

    pool = jnp.asarray(build_pool_matrix(bert_lens, bert_mask))        # (bz, seq_len, bpe_len)

    out = bert_embedding_forward(enc, w_attn, pool, w_proj)
    out = jax.block_until_ready(out)

    ref = reference_forward(enc, w_attn, pool, w_proj)
    # bf16 MXU operands + approximate reciprocal -> looser tolerance than pure f32.
    np.testing.assert_allclose(np.asarray(out), np.asarray(ref), rtol=3e-2, atol=2e-2)
    assert out.shape == (bz, seq_len, proj_dim)

    print("KERNEL_OK")
</pallas_src>

<mosaic_0001>
module attributes {stable_mosaic.version = 11 : i64} {
  func.func @bert_embed_kernel(%arg0: i32, %arg1: memref<1x3x128x128xbf16, #tpu.memory_space<vmem>>, %arg2: memref<128x128xbf16, #tpu.memory_space<vmem>>, %arg3: memref<1x8x128xbf16, #tpu.memory_space<vmem>>, %arg4: memref<128x128xbf16, #tpu.memory_space<vmem>>, %arg5: memref<1x8x128xf32, #tpu.memory_space<vmem>>) attributes {dimension_semantics = [#tpu.dimension_semantics<parallel>], iteration_bounds = array<i64: 2>, scalar_prefetch = 0 : i64, scratch_operands = 0 : i64, tpu.core_type = #tpu.core_type<tc>, window_params = [{transform_indices = @transform_0, window_bounds = array<i64: 1, 3, 128, 128>}, {pipeline_mode = #tpu.pipeline_mode<synchronous>, transform_indices = @transform_1, window_bounds = array<i64: 128, 128>}, {transform_indices = @transform_2, window_bounds = array<i64: 1, 8, 128>}, {pipeline_mode = #tpu.pipeline_mode<synchronous>, transform_indices = @transform_3, window_bounds = array<i64: 128, 128>}, {transform_indices = @transform_4, window_bounds = array<i64: 1, 8, 128>}]} {
    %c0 = arith.constant 0 : index
    %c0_0 = arith.constant 0 : index
    %0 = vector.load %arg2[%c0, %c0_0] : memref<128x128xbf16, #tpu.memory_space<vmem>>, vector<128x128xbf16>
    %cst = arith.constant 0xFF800000 : f32
    %1 = vector.broadcast %cst : f32 to vector<128x128xf32>
    %cst_1 = arith.constant 0.000000e+00 : f32
    %2 = vector.broadcast %cst_1 : f32 to vector<128x128xf32>
    %cst_2 = arith.constant 0.000000e+00 : f32
    %3 = vector.broadcast %cst_2 : f32 to vector<128x128xf32>
    %c0_i32 = arith.constant 0 : i32
    %c0_3 = arith.constant 0 : index
    %4 = arith.index_cast %c0_i32 : i32 to index
    %c0_4 = arith.constant 0 : index
    %c0_5 = arith.constant 0 : index
    %5 = vector.load %arg1[%c0_3, %4, %c0_4, %c0_5] : memref<1x3x128x128xbf16, #tpu.memory_space<vmem>>, vector<1x1x128x128xbf16>
    %6 = vector.shape_cast %5 : vector<1x1x128x128xbf16> to vector<128x128xbf16>
    %cst_6 = arith.constant dense<0.000000e+00> : vector<128x128xf32>
    %7 = tpu.matmul %6, %0, %cst_6 {dimension_numbers = #tpu.dot_dimension_numbers<[1], [0], [0], [1], [0, 0, 1, 1], [], []>} : vector<128x128xbf16>, vector<128x128xbf16>, vector<128x128xf32> -> vector<128x128xf32>
    %8 = arith.maximumf %1, %7 : vector<128x128xf32>
    %9 = arith.subf %1, %8 : vector<128x128xf32>
    %10 = math.exp %9 : vector<128x128xf32>
    %11 = arith.subf %7, %8 : vector<128x128xf32>
    %12 = math.exp %11 : vector<128x128xf32>
    %13 = arith.mulf %2, %10 : vector<128x128xf32>
    %14 = arith.extf %6 : vector<128x128xbf16> to vector<128x128xf32>
    %15 = arith.mulf %12, %14 : vector<128x128xf32>
    %16 = arith.addf %13, %15 : vector<128x128xf32>
    %17 = arith.mulf %3, %10 : vector<128x128xf32>
    %18 = arith.addf %17, %12 : vector<128x128xf32>
    %c1_i32 = arith.constant 1 : i32
    %c0_7 = arith.constant 0 : index
    %19 = arith.index_cast %c1_i32 : i32 to index
    %c0_8 = arith.constant 0 : index
    %c0_9 = arith.constant 0 : index
    %20 = vector.load %arg1[%c0_7, %19, %c0_8, %c0_9] : memref<1x3x128x128xbf16, #tpu.memory_space<vmem>>, vector<1x1x128x128xbf16>
    %21 = vector.shape_cast %20 : vector<1x1x128x128xbf16> to vector<128x128xbf16>
    %cst_10 = arith.constant dense<0.000000e+00> : vector<128x128xf32>
    %22 = tpu.matmul %21, %0, %cst_10 {dimension_numbers = #tpu.dot_dimension_numbers<[1], [0], [0], [1], [0, 0, 1, 1], [], []>} : vector<128x128xbf16>, vector<128x128xbf16>, vector<128x128xf32> -> vector<128x128xf32>
    %23 = arith.maximumf %8, %22 : vector<128x128xf32>
    %24 = arith.subf %8, %23 : vector<128x128xf32>
    %25 = math.exp %24 : vector<128x128xf32>
    %26 = arith.subf %22, %23 : vector<128x128xf32>
    %27 = math.exp %26 : vector<128x128xf32>
    %28 = arith.mulf %16, %25 : vector<128x128xf32>
    %29 = arith.extf %21 : vector<128x128xbf16> to vector<128x128xf32>
    %30 = arith.mulf %27, %29 : vector<128x128xf32>
    %31 = arith.addf %28, %30 : vector<128x128xf32>
    %32 = arith.mulf %18, %25 : vector<128x128xf32>
    %33 = arith.addf %32, %27 : vector<128x128xf32>
    %c2_i32 = arith.constant 2 : i32
    %c0_11 = arith.constant 0 : index
    %34 = arith.index_cast %c2_i32 : i32 to index
    %c0_12 = arith.constant 0 : index
    %c0_13 = arith.constant 0 : index
    %35 = vector.load %arg1[%c0_11, %34, %c0_12, %c0_13] : memref<1x3x128x128xbf16, #tpu.memory_space<vmem>>, vector<1x1x128x128xbf16>
    %36 = vector.shape_cast %35 : vector<1x1x128x128xbf16> to vector<128x128xbf16>
    %cst_14 = arith.constant dense<0.000000e+00> : vector<128x128xf32>
    %37 = tpu.matmul %36, %0, %cst_14 {dimension_numbers = #tpu.dot_dimension_numbers<[1], [0], [0], [1], [0, 0, 1, 1], [], []>} : vector<128x128xbf16>, vector<128x128xbf16>, vector<128x128xf32> -> vector<128x128xf32>
    %38 = arith.maximumf %23, %37 : vector<128x128xf32>
    %39 = arith.subf %23, %38 : vector<128x128xf32>
    %40 = math.exp %39 : vector<128x128xf32>
    %41 = arith.subf %37, %38 : vector<128x128xf32>
    %42 = math.exp %41 : vector<128x128xf32>
    %43 = arith.mulf %31, %40 : vector<128x128xf32>
    %44 = arith.extf %36 : vector<128x128xbf16> to vector<128x128xf32>
    %45 = arith.mulf %42, %44 : vector<128x128xf32>
    %46 = arith.addf %43, %45 : vector<128x128xf32>
    %47 = arith.mulf %33, %40 : vector<128x128xf32>
    %48 = arith.addf %47, %42 : vector<128x128xf32>
    %c3_i32 = arith.constant 3 : i32
    %49 = tpu.reciprocal %48 {approx = true} : vector<128x128xf32> -> vector<128x128xf32>
    %50 = arith.mulf %46, %49 : vector<128x128xf32>
    %c0_15 = arith.constant 0 : index
    %c0_16 = arith.constant 0 : index
    %c0_17 = arith.constant 0 : index
    %51 = vector.load %arg3[%c0_15, %c0_16, %c0_17] : memref<1x8x128xbf16, #tpu.memory_space<vmem>>, vector<1x8x128xbf16>
    %52 = vector.shape_cast %51 : vector<1x8x128xbf16> to vector<8x128xbf16>
    %53 = arith.truncf %50 : vector<128x128xf32> to vector<128x128xbf16>
    %cst_18 = arith.constant dense<0.000000e+00> : vector<8x128xf32>
    %54 = tpu.matmul %52, %53, %cst_18 {dimension_numbers = #tpu.dot_dimension_numbers<[1], [0], [0], [1], [0, 0, 1, 1], [], []>} : vector<8x128xbf16>, vector<128x128xbf16>, vector<8x128xf32> -> vector<8x128xf32>
    %55 = arith.truncf %54 : vector<8x128xf32> to vector<8x128xbf16>
    %c0_19 = arith.constant 0 : index
    %c0_20 = arith.constant 0 : index
    %56 = vector.load %arg4[%c0_19, %c0_20] : memref<128x128xbf16, #tpu.memory_space<vmem>>, vector<128x128xbf16>
    %cst_21 = arith.constant dense<0.000000e+00> : vector<8x128xf32>
    %57 = tpu.matmul %55, %56, %cst_21 {dimension_numbers = #tpu.dot_dimension_numbers<[1], [0], [0], [1], [0, 0, 1, 1], [], []>} : vector<8x128xbf16>, vector<128x128xbf16>, vector<8x128xf32> -> vector<8x128xf32>
    %c0_22 = arith.constant 0 : index
    %c0_23 = arith.constant 0 : index
    %c0_24 = arith.constant 0 : index
    %58 = vector.load %arg5[%c0_22, %c0_23, %c0_24] : memref<1x8x128xf32, #tpu.memory_space<vmem>>, vector<1x8x128xf32>
    %59 = vector.shape_cast %58 : vector<1x8x128xf32> to vector<8x128xf32>
    %60 = vector.shape_cast %57 : vector<8x128xf32> to vector<1x8x128xf32>
    tpu.vector_store %arg5[%c0_22, %c0_23, %c0_24], %60 {strides = array<i32>} : memref<1x8x128xf32, #tpu.memory_space<vmem>>, vector<1x8x128xf32>,
    return
  }
  func.func @transform_0(%arg0: i32) -> (i32, i32, i32, i32) {
    %c0_i32 = arith.constant 0 : i32
    %c0_i32_0 = arith.constant 0 : i32
    %c0_i32_1 = arith.constant 0 : i32
    %c0_i32_2 = arith.constant 0 : i32
    return %arg0, %c0_i32, %c0_i32_0, %c0_i32_1 : i32, i32, i32, i32
  }
  func.func @transform_1(%arg0: i32) -> (i32, i32) {
    %c0_i32 = arith.constant 0 : i32
    %c0_i32_0 = arith.constant 0 : i32
    %c0_i32_1 = arith.constant 0 : i32
    return %c0_i32, %c0_i32_0 : i32, i32
  }
  func.func @transform_2(%arg0: i32) -> (i32, i32, i32) {
    %c0_i32 = arith.constant 0 : i32
    %c0_i32_0 = arith.constant 0 : i32
    %c0_i32_1 = arith.constant 0 : i32
    return %arg0, %c0_i32, %c0_i32_0 : i32, i32, i32
  }
  func.func @transform_3(%arg0: i32) -> (i32, i32) {
    %c0_i32 = arith.constant 0 : i32
    %c0_i32_0 = arith.constant 0 : i32
    %c0_i32_1 = arith.constant 0 : i32
    return %c0_i32, %c0_i32_0 : i32, i32
  }
  func.func @transform_4(%arg0: i32) -> (i32, i32, i32) {
    %c0_i32 = arith.constant 0 : i32
    %c0_i32_0 = arith.constant 0 : i32
    %c0_i32_1 = arith.constant 0 : i32
    return %arg0, %c0_i32, %c0_i32_0 : i32, i32, i32
  }
}

</mosaic_0001>

<bundles_post_ra>
// kernel: tpu_custom_call.1
= control target key start
LH: loop header
LB: loop body
LE: loop exit
PB: predicated region body
PF: predicated region fallthrough
CT: control target
= control target key end

     0   :  { %s3653_s0 = inlined_call_operand.hbm [shape: bf16[2,3,128,128], index: 0, kind: input, shape index: {}]   ;;  %s3654_s1 = inlined_call_operand.hbm [shape: bf16[128,128], index: 1, kind: input, shape index: {}]   ;;  %s3655_s2 = inlined_call_operand.hbm [shape: bf16[2,8,128], index: 2, kind: input, shape index: {}]   ;;  %s3656_s3 = inlined_call_operand.hbm [shape: bf16[128,128], index: 3, kind: input, shape index: {}]   ;;  %s3657_s4 = inlined_call_operand.hbm [shape: f32[2,8,128], index: 4, kind: output, shape index: {}]  }
   0x1   :  { %3692 = sst [smem:[#allocation59_spill]] %s3653_s0 }
   0x2   :  { %3693 = sst [smem:[#allocation60_spill]] %s3654_s1 }
   0x3   :  { %9 = vsyncpa [#allocation3], 0 }
   0x4   :  { %11 = vsyncpa [#allocation3 + $0x1], 0 }
   0x5   :  { %12 = vsyncpa [#allocation6], 0 }
   0x6   :  { %13 = vsyncpa [#allocation4], 0 }
   0x7   :  { %15 = vsyncpa [#allocation4 + $0x1], 0  ;;  %s2609_s15 = smov 0   ;;  %s2611_s16 = smov 0  }
   0x8   :  { %s2613_s17 = smov 0   ;;  %s2615_s18 = smov 0  }
   0x9 LB: > { %s2630_s19 = sadd.s32 4294967295, %s2573_s18   ;;  %s1731_s20 = sadd.s32 4294967294, %s2573_s18   ;;  %s2573_s18 = sphi %s2615_s18, %s3850_s18   ;;  %s2569_s17 = sphi %s2613_s17, %s3849_s17   ;;  %s2565_s16 = sphi %s2611_s16, %s3848_s16   ;;  %s2561_s15 = sphi %s2609_s15, %s3847_s15  }
   0xa   : > { %p41_p0 = scmp.ne.s32.totalorder %s2565_s16, %s2561_s15  ;;  %p3661_p1 = scmp.eq.s32.totalorder %s2630_s19, 0 }
   0xb   : > { %p133_p2 = scmp.eq.s32.totalorder %s2630_s19, 1  ;;  %p139_p3 = scmp.eq.s32.totalorder %s1731_s20, 1 }
   0xc   : > { %p2639_p4 = por %p3661_p1, %p41_p0  ;;  %p1732_p5 = scmp.ge.s32.totalorder %s2573_s18, 1 }
   0xd   : > { %p2644_p6 = por %p139_p3, %p41_p0  ;;  %p146_p7 = scmp.lt.s32.totalorder %s2573_s18, 3 }
   0xe   : > { %s3694_s21 = scalar_select %p2639_p4, 1, 0 }
   0xf   : > { %s3695_s22 = scalar_select %p2644_p6, 1, 0 }
  0x10   : > { %p2649_p8 = pnand %p1732_p5, %p146_p7  ;;  %s2575_s24 = smov [#allocation5]  }
  0x11   : > { %s158_s25 = sshll.u32 %s2575_s24, 4  ;;  %s2663_s27 = sadd.s32 1, %s2573_s18   ;;  %s159_s25 = int_to_ptr.vmem [resolvable:$true] %s158_s25 }
  0x12   : > { %s3696_s23 = scalar_select %p2649_p8, 1, 0 }
  0x13   : > { %p2039_p9 = pneg %p2649_p8  ;;  %s28_s28 = sadd.s32 1, %s2569_s17 }
  0x14   : > { %s25_s29 = ssub.s32 %s2573_s18, %s2663_s27  ;;  %s2400_s30 = scalar_lea.vmem %s159_s25, 1024 }
  0x15   : > { %p2658_p11 = pnand %p2039_p9, %p3661_p1  ;;  %p2401_p13 = scmp.ne.s32.totalorder %s159_s25, %s2400_s30 }
  0x16   : > { %p2408_p5 = scmp.lt.s32.totalorder %s159_s25, %s159_s25  ;;  %p2409_p7 = scmp.lt.s32.totalorder %s2400_s30, %s2400_s30 }
  0x17   : > { %p3662_p12 = pneg %p2658_p11 }
  0x18   : > { %p2410_p9 = por %p2409_p7, %p2408_p5 }
  0x19   : > { %p2403_p0 = pnand %p2401_p13, %p3662_p12 }
  0x1b   : > { %p2404_p3 = pneg %p2403_p0 }
  0x1d   : > { %p2411_p10 = pnand %p2410_p9, %p2404_p3 }
  0x1f   : > { %2414 = shalt.err (!%p2411_p10)
}
  0x20   : > { %s3659_s5 = smov 64   ;;  %s2577_s6 = smov 4  }
  0x21   : > { %s3698_s1 = sld [smem:[#allocation60_spill]]  ;;  %p26_p10 = scmp.eq.s32.totalorder %s25_s29, 0 }
  0x22   : > { %p35_p13 = scmp.ne.s32.totalorder %s2569_s17, %s2565_s16  ;;  %p36_p0 = scmp.eq.s32.totalorder %s2573_s18, 0 }
  0x23   : > { %p2059_p3 = scmp.lt.s32.totalorder %s2573_s18, 2  ;;  %s185_s11 = sand.u32 1, %s2573_s18  }
  0x24   : > { %s2686_s9 = scalar_select %p26_p10, %s2569_s17, %s28_s28  }
  0x25   : > { %p37_p5 = por %p36_p0, %p35_p13  ;;  %p2690_p7 = por %p133_p2, %p35_p13 }
  0x26   : > { %s3658_s12 = sand.u32 1, %s2569_s17   ;;  %s2023_s14 = smul.u32 3072, %s2573_s18 }
  0x27   : > { %2042 = dma.hbm_to_vmem [thread:$0]  (!%p2658_p11), %s3698_s1, 1024, %s159_s25, [#allocation6], %s3659_s5, %s3659_s5, %s2577_s6  }
  0x28   : > { %s3699_s10 = scalar_select %p2690_p7, 1, 0 }
  0x29   : > { %s2022_s13 = smul.u32 192, %s3658_s12  ;;  %p2699_p9 = pnand %p2059_p3, %p37_p5 }
  0x2a   : > { %s3701_s0 = sld [smem:[#allocation59_spill]]  ;;  %s2710_s7 = scalar_lea.sflag [#allocation3], %s185_s11 }
  0x2b   : > { %s189_s29 = scalar_lea.vmem [#allocation2], %s2022_s13  ;;  %p2417_p10 = pneg %p2699_p9 }
  0x2c   : > { %s196_s30 = sshll.u32 %s189_s29, 4  ;;  %s2708_s30 = int_to_ptr.vmem [resolvable:$true] %s196_s30 }
  0x30   : > { %s2706_s28 = scalar_lea.hbm %s3701_s0, %s2023_s14  ;;  %s2420_s25 = scalar_lea.hbm %s3701_s0, 6144 }
  0x31   : > { %s2415_s8 = scalar_lea.hbm %s2706_s28, 3072  ;;  %p2421_p3 = scmp.lt.s32.totalorder %s2706_s28, %s3701_s0 }
  0x32   : > { %p2416_p2 = scmp.ne.s32.totalorder %s2706_s28, %s2415_s8  ;;  %p2422_p5 = scmp.lt.s32.totalorder %s2420_s25, %s2415_s8 }
  0x34   : > { %p2418_p13 = pnand %p2417_p10, %p2416_p2  ;;  %p2423_p1 = por %p2422_p5, %p2421_p3 }
  0x36   : > { %p2419_p0 = pneg %p2418_p13 }
  0x38   : > { %p2424_p12 = pnand %p2423_p1, %p2419_p0 }
  0x3a   : > { %2427 = shalt.err (!%p2424_p12)
}
  0x3b   : > { %s2428_s11 = scalar_lea.vmem %s2708_s30, 3072  ;;  %s2578_s13 = smov [#allocation2]  }
  0x3c   : > { %p2429_p6 = scmp.ne.s32.totalorder %s2708_s30, %s2428_s11  ;;  %s2433_s29 = sshll.u32 %s2578_s13, 4  ;;  %s2434_s29 = int_to_ptr.vmem [resolvable:$false] %s2433_s29 }
  0x3d   : > { %s2435_s24 = scalar_lea.vmem %s2434_s29, 6144  ;;  %p2436_p7 = scmp.lt.s32.totalorder %s2708_s30, %s2434_s29 }
  0x3e   : > { %p2431_p2 = pnand %p2429_p6, %p2417_p10  ;;  %p2437_p4 = scmp.lt.s32.totalorder %s2435_s24, %s2428_s11 }
  0x40   : > { %p2432_p13 = pneg %p2431_p2  ;;  %p2438_p8 = por %p2437_p4, %p2436_p7 }
  0x42   : > { %p2439_p3 = pnand %p2438_p8, %p2432_p13 }
  0x44   : > { %2442 = shalt.err (!%p2439_p3)
}
  0x45   : > { %s3702_s5 = smov 64   ;;  %s2579_s12 = smov [#allocation8]  }
  0x46   : > { %2049 = dma.hbm_to_vmem [thread:$0]  (!%p2699_p9), %s2706_s28, 3072, %s2708_s30, %s2710_s7, %s3702_s5, %s3702_s5, %s2577_s6  }
  0x47   : > { %s171_s8 = sshll.u32 %s2579_s12, 4  ;;  %s3703_s14 = sand.u32 1, %s2569_s17   ;;  %s172_s8 = int_to_ptr.vmem [resolvable:$true] %s171_s8 }
  0x48   : > { %s1737_s25 = sshll.u32 %s3703_s14, 2  ;;  %s2454_s11 = scalar_lea.vmem %s172_s8, 1024 }
  0x49   : > { %p2455_p1 = scmp.ne.s32.totalorder %s172_s8, %s2454_s11  ;;  %p3704_p4 = pneg %p2658_p11 }
  0x4a   : > { %p2462_p12 = scmp.lt.s32.totalorder %s172_s8, %s172_s8  ;;  %p2463_p7 = scmp.lt.s32.totalorder %s2454_s11, %s2454_s11 }
  0x4b   : > { %p2457_p6 = pnand %p2455_p1, %p3704_p4 }
  0x4c   : > { %p2464_p0 = por %p2463_p7, %p2462_p12 }
  0x4d   : > { %p2458_p8 = pneg %p2457_p6 }
  0x4f   : > { %p2465_p5 = pnand %p2464_p0, %p2458_p8 }
  0x51   : > { %2468 = shalt.err (!%p2465_p5)
}
  0x52   : > { %2045 = dma.hbm_to_vmem [thread:$0]  (!%p2658_p11), %s3656_s3, 1024, %s172_s8, [#allocation6], %s3702_s5, %s3702_s5, %s2577_s6  }
  0x53   : > { %s1738_s13 = sshll.u32 %s2573_s18, 6  ;;  %s210_s29 = scalar_lea.vmem [#allocation7], %s1737_s25 }
  0x54   : > { %s217_s24 = sshll.u32 %s210_s29, 4  ;;  %s215_s11 = scalar_lea.hbm %s3655_s2, %s1738_s13  ;;  %s218_s24 = int_to_ptr.vmem [resolvable:$true] %s217_s24 }
  0x55   : > { %s2469_s0 = scalar_lea.hbm %s215_s11, 64  ;;  %s2474_s28 = scalar_lea.hbm %s3655_s2, 128 }
  0x56   : > { %p2470_p2 = scmp.ne.s32.totalorder %s215_s11, %s2469_s0  ;;  %p2475_p11 = scmp.lt.s32.totalorder %s215_s11, %s3655_s2 }
  0x57   : > { %p2476_p1 = scmp.lt.s32.totalorder %s2474_s28, %s2469_s0 }
  0x58   : > { %p2472_p13 = pnand %p2470_p2, %p2417_p10 }
  0x59   : > { %p2477_p4 = por %p2476_p1, %p2475_p11 }
  0x5a   : > { %p2473_p3 = pneg %p2472_p13 }
  0x5c   : > { %p2478_p6 = pnand %p2477_p4, %p2473_p3 }
  0x5e   : > { %2481 = shalt.err (!%p2478_p6)
}
  0x5f   : > { %s2482_s5 = scalar_lea.vmem %s218_s24, 64  ;;  %s2580_s8 = smov [#allocation7]  }
  0x60   : > { %p2483_p8 = scmp.ne.s32.totalorder %s218_s24, %s2482_s5  ;;  %s2487_s25 = sshll.u32 %s2580_s8, 4  ;;  %s2488_s25 = int_to_ptr.vmem [resolvable:$false] %s2487_s25 }
  0x61   : > { %s2489_s1 = scalar_lea.vmem %s2488_s25, 128  ;;  %p2490_p0 = scmp.lt.s32.totalorder %s218_s24, %s2488_s25 }
  0x62   : > { %p2485_p12 = pnand %p2483_p8, %p2417_p10  ;;  %p2491_p5 = scmp.lt.s32.totalorder %s2489_s1, %s2482_s5 }
  0x64   : > { %p2486_p7 = pneg %p2485_p12  ;;  %p2492_p2 = por %p2491_p5, %p2490_p0 }
  0x66   : > { %p2493_p13 = pnand %p2492_p2, %p2486_p7 }
  0x68   : > { %2496 = shalt.err (!%p2493_p13)
}
  0x69   : > { %2052 = dma.hbm_to_vmem [thread:$0]  (!%p2699_p9), %s215_s11, 64, %s218_s24, %s2710_s7  }
  0x6a   : > { %p3705_p3 = scmp.ne.s32.totalorder %s3696_s23, 0 }
  0x6c   : > { %226 = sbr.rel (%p3705_p3) target bundleno = 953 (0x3b9), region = 36 }
  0x71   : > { %s228_s0 = sand.u32 1, %s2630_s19   ;;  %s2776_s13 = sand.u32 1, %s2565_s16  }
  0x72   : > { %s2024_s29 = smul.u32 192, %s2776_s13  ;;  %s229_s12 = scalar_lea.sflag [#allocation3], %s228_s0 }
  0x73   : > { %p3706_p10 = scmp.ne.s32.totalorder %s3694_s21, 0 }
  0x74   : > { %s2779_s14 = scalar_lea.vmem [#allocation2], %s2024_s29 }
  0x75   : > { %2540 = dma.done.wait (%p3706_p10), %s229_s12, 3072  }
  0x76   : > { %2542 = vsyncadd (%p3706_p10), %s229_s12, 4294964224  ;;  %p3707_p9 = scmp.eq.s32.totalorder %s2630_s19, 0 }
  0x78   : > { %2544 = dma.done.wait (%p3707_p9), [#allocation6], 1024   ;;  %p3708_p11 = pmov %p3707_p9 }
  0x79   : > { %s1741_s23 = sshll.u32 %s2776_s13, 2 }
  0x7a   : > { %2546 = vsyncadd (%p3708_p11), [#allocation6], 4294966272  ;;  %s2790_s20 = scalar_lea.vmem [#allocation7], %s1741_s23 }
  0x7b   : > { %2548 = dma.done.wait (%p3706_p10), %s229_s12, 64  }
  0x7c   : > { %2550 = vsyncadd (%p3706_p10), %s229_s12, 4294967232  ;;  %p3709_p1 = pmov %p3707_p9 }
  0x7e   : > { %2552 = dma.done.wait (%p3709_p1), [#allocation6], 1024   ;;  %p3710_p4 = pmov %p3709_p1 }
  0x7f   : > { %v2101_v0 = vld [vmem:[#allocation5 + $0x38] sm:$0xff]   ;;  %v2102_v1 = vld [vmem:[#allocation5 + $0x30] sm:$0xff]   ;;  %v2103_v2 = vld [vmem:[#allocation5 + $0x28] sm:$0xff]   ;;  %vm2582_vm0 = vmmov 0   ;;  %s1743_s21 = sshll.u32 %s2776_s13, 3  ;;  %s1817_s11 = sshll.u32 %s2630_s19, 7 }
  0x80   : > { %2554 = vsyncadd (%p3710_p4), [#allocation6], 4294966272  ;;  %1886 = vmatprep.subr.bf16.mxu0 %v2101_v0  ;;  %1918 = vmatprep.subr.bf16.mxu1 %v2101_v0  ;;  %v2104_v3 = vld [vmem:[#allocation5 + $0x20] sm:$0xff]   ;;  %v2105_v6 = vld [vmem:[#allocation5 + $0x18] sm:$0xff]   ;;  %s278_s7 = scalar_lea.vmem [#allocation9], %s1743_s21  ;;  %s3612_s30 = scalar_lea.hbm %s3657_s4, %s1817_s11 }
  0x81   : > { %1887 = vmatpush3.bf16.msra.mxu0 %v2101_v0  ;;  %1919 = vmatpush3.bf16.msra.mxu1 %v2101_v0  ;;  %v2801_v4 = vld [vmem:[%s2779_s14] sm:$0xff]   ;;  %v2106_v7 = vld [vmem:[#allocation5 + $0x10] sm:$0xff]   ;;  %v2107_v8 = vld [vmem:[#allocation5 + $0x8] sm:$0xff]   ;;  %s1622_s24 = sshll.u32 %s278_s7, 4  ;;  %s1609_s6 = scalar_lea.sflag [#allocation4], %s2776_s13  ;;  %s3607_s24 = int_to_ptr.vmem [resolvable:$true] %s1622_s24 }
  0x82   : > { %1888 = vmatprep.subr.bf16.mxu0 %v2102_v1  ;;  %1920 = vmatprep.subr.bf16.mxu1 %v2102_v1  ;;  %v2804_v5 = vld [vmem:[%s2779_s14 + $0x40] sm:$0xff]   ;;  %v2809_v10 = vld [vmem:[%s2779_s14 + $0x8] sm:$0xff]   ;;  %v2815_v12 = vld [vmem:[%s2779_s14 + $0x10] sm:$0xff]   ;;  %v617_v32 = vunpack.c.l.bf16 %v2801_v4  ;;  %s2497_s5 = scalar_lea.vmem %s3607_s24, 128  ;;  %p3844_p8 = scmp.ne.s32.totalorder %s3699_s10, 0 }
  0x83   : > { %1902 = vmatprep.mubr.bf16.mxu0 %v2801_v4  ;;  %1934 = vmatprep.mubr.bf16.mxu1 %v2804_v5  ;;  %v2108_v9 = vld [vmem:[#allocation5] sm:$0xff]   ;;  %v2812_v11 = vld [vmem:[%s2779_s14 + $0x48] sm:$0xff]   ;;  %v2818_v13 = vld [vmem:[%s2779_s14 + $0x50] sm:$0xff]   ;;  %v619_v36 = vunpack.c.l.bf16 %v2809_v10  ;;  %p2498_p6 = scmp.ne.s32.totalorder %s3607_s24, %s2497_s5  ;;  %s2583_s19 = smov [#allocation9]  }
  0x84   : > { %v2824_v14 = vld [vmem:[%s2779_s14 + $0x18] sm:$0xff]   ;;  %v2831_v16 = vld [vmem:[%s2779_s14 + $0x20] sm:$0xff]   ;;  %v2840_v18 = vld [vmem:[%s2779_s14 + $0x28] sm:$0xff]   ;;  %v973_v38 = vunpack.c.l.bf16 %v2812_v11  ;;  %s2501_s8 = sshll.u32 %s2583_s19, 4  ;;  %s2502_s8 = int_to_ptr.vmem [resolvable:$false] %s2501_s8 }
  0x85   : > { %1889 = vmatpush3.bf16.msra.mxu0 %v2102_v1  ;;  %1921 = vmatpush3.bf16.msra.mxu1 %v2102_v1  ;;  %v2827_v15 = vld [vmem:[%s2779_s14 + $0x58] sm:$0xff]   ;;  %v2834_v17 = vld [vmem:[%s2779_s14 + $0x60] sm:$0xff]   ;;  %v2843_v19 = vld [vmem:[%s2779_s14 + $0x68] sm:$0xff]   ;;  %p2499_p12 = pnand %p2498_p6, %p3844_p8  ;;  %s2503_s25 = scalar_lea.vmem %s2502_s8, 256 }
  0x86   : > { %1890 = vmatprep.subr.bf16.mxu0 %v2103_v2  ;;  %1922 = vmatprep.subr.bf16.mxu1 %v2103_v2  ;;  %v2847_v20 = vld [vmem:[%s2779_s14 + $0x30] sm:$0xff]   ;;  %v2856_v22 = vld [vmem:[%s2779_s14 + $0x38] sm:$0xff]   ;;  %v2863_v24 = vld [vmem:[%s2779_s14 + $0x80] sm:$0xff]   ;;  %p2504_p0 = scmp.lt.s32.totalorder %s3607_s24, %s2502_s8  ;;  %p2505_p5 = scmp.lt.s32.totalorder %s2503_s25, %s2497_s5 }
  0x87   : > { %v2850_v21 = vld [vmem:[%s2779_s14 + $0x70] sm:$0xff]   ;;  %v2859_v23 = vld [vmem:[%s2779_s14 + $0x78] sm:$0xff]   ;;  %3711 = vst [vmem:[#allocation15_spill] sm:$0xff] %v2863_v24  ;;  %v2869_v25 = vld [vmem:[%s2779_s14 + $0x88] sm:$0xff]   ;;  %p2500_p7 = pneg %p2499_p12 }
  0x88   : > { %3712 = vst [vmem:[#allocation16_spill] sm:$0xff] %v2869_v25  ;;  %v2872_v26 = vld [vmem:[%s2779_s14 + $0x90] sm:$0xff]   ;;  %v2877_v27 = vld [vmem:[%s2779_s14 + $0x98] sm:$0xff]   ;;  %v2880_v28 = vld [vmem:[%s2779_s14 + $0xa0] sm:$0xff]   ;;  %p2506_p2 = por %p2505_p5, %p2504_p0 }
  0x89   : > { %1891 = vmatpush3.bf16.msra.mxu0 %v2103_v2  ;;  %1923 = vmatpush3.bf16.msra.mxu1 %v2103_v2  ;;  %3713 = vst [vmem:[#allocation17_spill] sm:$0xff] %v2872_v26  ;;  %3714 = vst [vmem:[#allocation18_spill] sm:$0xff] %v2877_v27  ;;  %v2885_v29 = vld [vmem:[%s2779_s14 + $0xa8] sm:$0xff]   ;;  %v2888_v30 = vld [vmem:[%s2779_s14 + $0xb0] sm:$0xff]  }
  0x8a   : > { %1892 = vmatprep.subr.bf16.mxu0 %v2104_v3  ;;  %1924 = vmatprep.subr.bf16.mxu1 %v2104_v3  ;;  %3715 = vst [vmem:[#allocation19_spill] sm:$0xff] %v2880_v28  ;;  %3716 = vst [vmem:[#allocation20_spill] sm:$0xff] %v2885_v29  ;;  %v2893_v31 = vld [vmem:[%s2779_s14 + $0xb8] sm:$0xff]   ;;  %p2507_p13 = pnand %p2506_p2, %p2500_p7 }
  0x8b   : > { %3717 = vst [vmem:[#allocation21_spill] sm:$0xff] %v2888_v30  ;;  %3718 = vst [vmem:[#allocation22_spill] sm:$0xff] %v2893_v31 }
  0x8d   : > { %1893 = vmatpush3.bf16.msra.mxu0 %v2104_v3  ;;  %1925 = vmatpush3.bf16.msra.mxu1 %v2104_v3 }
  0x8e   : > { %1894 = vmatprep.subr.bf16.mxu0 %v2105_v6  ;;  %1926 = vmatprep.subr.bf16.mxu1 %v2105_v6 }
  0x91   : > { %1895 = vmatpush3.bf16.msra.mxu0 %v2105_v6  ;;  %1927 = vmatpush3.bf16.msra.mxu1 %v2105_v6 }
  0x92   : > { %1896 = vmatprep.subr.bf16.mxu0 %v2106_v7  ;;  %1928 = vmatprep.subr.bf16.mxu1 %v2106_v7 }
  0x95   : > { %1897 = vmatpush3.bf16.msra.mxu0 %v2106_v7  ;;  %1929 = vmatpush3.bf16.msra.mxu1 %v2106_v7 }
  0x96   : > { %1898 = vmatprep.subr.bf16.mxu0 %v2107_v8  ;;  %1930 = vmatprep.subr.bf16.mxu1 %v2107_v8 }
  0x99   : > { %1899 = vmatpush3.bf16.msra.mxu0 %v2107_v8  ;;  %1931 = vmatpush3.bf16.msra.mxu1 %v2107_v8 }
  0x9a   : > { %1900 = vmatprep.subr.bf16.mxu0 %v2108_v9  ;;  %1932 = vmatprep.subr.bf16.mxu1 %v2108_v9 }
  0x9d   : > { %1901 = vmatpush3.bf16.msra.mxu0 %v2108_v9  ;;  %1933 = vmatpush3.bf16.msra.mxu1 %v2108_v9 }
  0x9e   : > { %1950 = vmatprep.subr.bf16.mxu0 %v2101_v0 }
  0xa0   : > { %1903 = vmatmul.mubr.bf16.vlgmr.msra.gmra.mxu0 %v2809_v10  ;;  %1935 = vmatmul.mubr.bf16.vlgmr.msra.gmra.mxu1 %v2812_v11 }
  0xa1   : > { %1951 = vmatpush3.bf16.msra.mxu0 %v2101_v0  ;;  %1906 = vmatprep.mubr.bf16.mxu0 %v2815_v12 }
  0xa2   : > { %1952 = vmatprep.subr.bf16.mxu0 %v2102_v1  ;;  %1938 = vmatprep.mubr.bf16.mxu1 %v2818_v13 }
  0xa5   : > { %1953 = vmatpush3.bf16.msra.mxu0 %v2102_v1 }
  0xa6   : > { %1954 = vmatprep.subr.bf16.mxu0 %v2103_v2 }
  0xa8   : > { %1907 = vmatmul.mubr.bf16.gmra.mxu0 %v2824_v14  ;;  %1939 = vmatmul.mubr.bf16.gmra.mxu1 %v2827_v15 }
  0xa9   : > { %1955 = vmatpush3.bf16.msra.mxu0 %v2103_v2  ;;  %1910 = vmatprep.mubr.bf16.mxu0 %v2831_v16 }
  0xaa   : > { %1956 = vmatprep.subr.bf16.mxu0 %v2104_v3  ;;  %1942 = vmatprep.mubr.bf16.mxu1 %v2834_v17 }
  0xad   : > { %1957 = vmatpush3.bf16.msra.mxu0 %v2104_v3 }
  0xae   : > { %1958 = vmatprep.subr.bf16.mxu0 %v2105_v6 }
  0xb0   : > { %1911 = vmatmul.mubr.bf16.gmra.mxu0 %v2840_v18  ;;  %1943 = vmatmul.mubr.bf16.gmra.mxu1 %v2843_v19 }
  0xb1   : > { %1959 = vmatpush3.bf16.msra.mxu0 %v2105_v6  ;;  %1914 = vmatprep.mubr.bf16.mxu0 %v2847_v20 }
  0xb2   : > { %1960 = vmatprep.subr.bf16.mxu0 %v2106_v7  ;;  %1946 = vmatprep.mubr.bf16.mxu1 %v2850_v21 }
  0xb5   : > { %1961 = vmatpush3.bf16.msra.mxu0 %v2106_v7 }
  0xb6   : > { %1962 = vmatprep.subr.bf16.mxu0 %v2107_v8 }
  0xb8   : > { %1915 = vmatmul.mubr.bf16.gmra.mxu0 %v2856_v22  ;;  %1947 = vmatmul.mubr.bf16.gmra.mxu1 %v2859_v23 }
  0xb9   : > { %1963 = vmatpush3.bf16.msra.mxu0 %v2107_v8  ;;  %1966 = vmatprep.mubr.bf16.mxu0 %v2863_v24  ;;  %v3724_v24 = vunpack.c.l.bf16 %v2804_v5 }
  0xba   : > { %1964 = vmatprep.subr.bf16.mxu0 %v2108_v9 }
  0xbd   : > { %1965 = vmatpush3.bf16.msra.mxu0 %v2108_v9 }
  0xc0   : > { %1967 = vmatmul.mubr.bf16.vlgmr.msra.gmra.mxu0 %v2869_v25 }
  0xc1   : > { %1970 = vmatprep.mubr.bf16.mxu0 %v2872_v26  ;;  %v3752_v26 = vunpack.c.h.bf16 %v2815_v12 }
  0xc8   : > { %1971 = vmatmul.mubr.bf16.gmra.mxu0 %v2877_v27 }
  0xc9   : > { %1974 = vmatprep.mubr.bf16.mxu0 %v2880_v28 }
  0xd0   : > { %1975 = vmatmul.mubr.bf16.gmra.mxu0 %v2885_v29 }
  0xd1   : > { %1978 = vmatprep.mubr.bf16.mxu0 %v2888_v30 }
  0xd8   : > { %1979 = vmatmul.mubr.bf16.gmra.mxu0 %v2893_v31 }
 0x160   : > { %v1904_v63 = vpop.f32.mrf.mxu0  ;;  %v1936_v0 = vpop.f32.mrf.mxu1 }
 0x161   : > { %v507_v61 = vsub.f32 -inf, %v1904_v63  ;;  %v555_v2 = vsub.f32 %v1904_v63, %v1904_v63  ;;  %v2939_v58 = vmax.f32 %v1904_v63, %v1936_v0 }
 0x162   : > { %v442_v8 = vpop.f32.mrf.mxu0  ;;  %v780_v59 = vpop.f32.mrf.mxu1 }
 0x163   : > { %v525_v56 = vmul.f32 1.442695, %v507_v61  ;;  %v573_v57 = vmul.f32 1.442695, %v555_v2  ;;  %v861_v62 = vsub.f32 %v1904_v63, %v2939_v58  ;;  %v909_v1 = vsub.f32 %v1936_v0, %v2939_v58 }
 0x164   : > { %v505_v51 = vsub.f32 -inf, %v442_v8  ;;  %v553_v49 = vsub.f32 %v442_v8, %v442_v8  ;;  %v2948_v55 = vmax.f32 %v442_v8, %v780_v59  ;;  %v1905_v3 = vpop.f32.mrf.mxu0  ;;  %v1937_v7 = vpop.f32.mrf.mxu1 }
 0x165   : > { %2165 = vpow2.f32 %v525_v56  ;;  %v879_v6 = vmul.f32 1.442695, %v861_v62  ;;  %v927_v53 = vmul.f32 1.442695, %v909_v1  ;;  %v508_v9 = vsub.f32 -inf, %v1905_v3 }
 0x166   : > { %2167 = vpow2.f32 %v573_v57  ;;  %v521_v50 = vmul.f32 1.442695, %v505_v51  ;;  %v569_v61 = vmul.f32 1.442695, %v553_v49  ;;  %v859_v2 = vsub.f32 %v442_v8, %v2948_v55  ;;  %v445_v63 = vpop.f32.mrf.mxu0  ;;  %v783_v48 = vpop.f32.mrf.mxu1 }
 0x167   : > { %2169 = vpow2.f32 %v879_v6  ;;  %v907_v0 = vsub.f32 %v780_v59, %v2948_v55  ;;  %v527_v60 = vmul.f32 1.442695, %v508_v9  ;;  %v556_v54 = vsub.f32 %v1905_v3, %v1905_v3 }
 0x168   : > { %2171 = vpow2.f32 %v927_v53  ;;  %v875_v52 = vmul.f32 1.442695, %v859_v2  ;;  %v2952_v43 = vmax.f32 %v1905_v3, %v1937_v7  ;;  %v506_v56 = vsub.f32 -inf, %v445_v63  ;;  %v1908_v62 = vpop.f32.mrf.mxu0  ;;  %v1940_v41 = vpop.f32.mrf.mxu1 }
 0x169   : > { %2173 = vpow2.f32 %v521_v50  ;;  %v923_v1 = vmul.f32 1.442695, %v907_v0  ;;  %v575_v57 = vmul.f32 1.442695, %v556_v54  ;;  %v554_v51 = vsub.f32 %v445_v63, %v445_v63 }
 0x16a   : > { %2175 = vpow2.f32 %v569_v61  ;;  %v862_v49 = vsub.f32 %v1905_v3, %v2952_v43  ;;  %v910_v8 = vsub.f32 %v1937_v7, %v2952_v43  ;;  %v523_v6 = vmul.f32 1.442695, %v506_v56  ;;  %v458_v59 = vpop.f32.mrf.mxu0 }
 0x16b   : > { %2177 = vpow2.f32 %v875_v52  ;;  %v571_v9 = vmul.f32 1.442695, %v554_v51  ;;  %v2956_v53 = vmax.f32 %v445_v63, %v783_v48  ;;  %v511_v2 = vsub.f32 -inf, %v1908_v62  ;;  %v796_v51 = vpop.f32.mrf.mxu1 }
 0x16c   : > { %2179 = vpow2.f32 %v923_v1  ;;  %v881_v47 = vmul.f32 1.442695, %v862_v49  ;;  %v929_v45 = vmul.f32 1.442695, %v910_v8  ;;  %v559_v50 = vsub.f32 %v1908_v62, %v1908_v62  ;;  %v2958_v0 = vpop.f32.mrf.mxu0 }
 0x16d   : > { %2181 = vpow2.f32 %v527_v60  ;;  %v860_v54 = vsub.f32 %v445_v63, %v2956_v53  ;;  %v908_v3 = vsub.f32 %v783_v48, %v2956_v53  ;;  %v533_v7 = vmul.f32 1.442695, %v511_v2 }
 0x16e   : > { %2183 = vpow2.f32 %v575_v57  ;;  %v581_v61 = vmul.f32 1.442695, %v559_v50  ;;  %v2962_v56 = vmax.f32 %v1908_v62, %v1940_v41  ;;  %v509_v52 = vsub.f32 -inf, %v458_v59  ;;  %v2964_v42 = vpop.f32.mrf.mxu0 }
 0x16f   : > { %2185 = vpow2.f32 %v881_v47  ;;  %v877_v1 = vmul.f32 1.442695, %v860_v54  ;;  %v925_v49 = vmul.f32 1.442695, %v908_v3  ;;  %v557_v8 = vsub.f32 %v458_v59, %v458_v59 }
 0x170   : > { %2187 = vpow2.f32 %v929_v45  ;;  %v865_v60 = vsub.f32 %v1908_v62, %v2962_v56  ;;  %v913_v63 = vsub.f32 %v1940_v41, %v2962_v56  ;;  %v529_v40 = vmul.f32 1.442695, %v509_v52  ;;  %v2968_v48 = vpop.f32.mrf.mxu0 }
 0x171   : > { %2189 = vpow2.f32 %v523_v6  ;;  %v577_v57 = vmul.f32 1.442695, %v557_v8  ;;  %v2970_v2 = vmax.f32 %v458_v59, %v796_v51  ;;  %v512_v50 = vsub.f32 -inf, %v2958_v0  ;;  %v1941_v6 = vpop.f32.mrf.mxu1 }
 0x172   : > { %v2166_v46 = vpop.eup %2165  ;;  %2191 = vpow2.f32 %v571_v9  ;;  %v887_v47 = vmul.f32 1.442695, %v865_v60  ;;  %v935_v54 = vmul.f32 1.442695, %v913_v63  ;;  %v560_v45 = vsub.f32 %v2958_v0, %v2958_v0  ;;  %v2977_v8 = vpop.f32.mrf.mxu0 }
 0x173   : > { %v2168_v3 = vpop.eup %2167  ;;  %v603_v62 = vmul.f32 0.0, %v2166_v46  ;;  %2193 = vpow2.f32 %v877_v1  ;;  %v863_v41 = vsub.f32 %v458_v59, %v2970_v2  ;;  %v911_v52 = vsub.f32 %v796_v51, %v2970_v2 }
 0x174   : > { %v2979_v44 = vpop.eup %2169  ;;  %v635_v9 = vmul.f32 %v2168_v3, %v619_v36  ;;  %2195 = vpow2.f32 %v925_v49  ;;  %v535_v60 = vmul.f32 1.442695, %v512_v50  ;;  %v583_v63 = vmul.f32 1.442695, %v560_v45  ;;  %v2994_v45 = vpop.f32.mrf.mxu0 }
 0x175   : > { %3719 = vst [vmem:[#allocation23_spill] sm:$0xff] %v2979_v44  ;;  %v2172_v35 = vpop.eup %2171  ;;  %v667_v33 = vadd.f32 %v2168_v3, %v603_v62  ;;  %2197 = vpow2.f32 %v533_v7  ;;  %v883_v46 = vmul.f32 1.442695, %v863_v41  ;;  %v931_v1 = vmul.f32 1.442695, %v911_v52 }
 0x176   : > { %v2174_v39 = vpop.eup %2173  ;;  %v2983_v59 = vadd.f32 %v635_v9, %v603_v62  ;;  %v2987_v51 = vmul.f32 %v2172_v35, %v973_v38  ;;  %2199 = vpow2.f32 %v581_v61  ;;  %v2990_v37 = vmax.f32 %v2958_v0, %v1941_v6 }
 0x177   : > { %v2176_v36 = vpop.eup %2175  ;;  %v1021_v49 = vmul.f32 %v2979_v44, %v667_v33  ;;  %v601_v50 = vmul.f32 0.0, %v2174_v39  ;;  %2201 = vpow2.f32 %v887_v47  ;;  %v510_v7 = vsub.f32 -inf, %v2964_v42  ;;  %v799_v47 = vpop.f32.mrf.mxu1 }
 0x178   : > { %3720 = vst [vmem:[#allocation24_spill] sm:$0xff] %v2983_v59  ;;  %3721 = vst [vmem:[#allocation25_spill] sm:$0xff] %v2987_v51  ;;  %v2996_v3 = vpop.eup %2177  ;;  %v633_v62 = vmul.f32 %v2176_v36, %v617_v32  ;;  %2203 = vpow2.f32 %v935_v54  ;;  %v866_v38 = vsub.f32 %v2958_v0, %v2990_v37  ;;  %v914_v61 = vsub.f32 %v1941_v6, %v2990_v37 }
 0x179   : > { %3722 = vst [vmem:[#allocation26_spill] sm:$0xff] %v2996_v3  ;;  %v2180_v41 = vpop.eup %2179  ;;  %v3003_v52 = vadd.f32 %v2172_v35, %v1021_v49  ;;  %v665_v33 = vadd.f32 %v2176_v36, %v601_v50  ;;  %2205 = vpow2.f32 %v529_v40  ;;  %v531_v39 = vmul.f32 1.442695, %v510_v7  ;;  %v3012_v49 = vpop.f32.mrf.mxu0 }
 0x17a   : > { %v2182_v9 = vpop.eup %2181  ;;  %v3005_v34 = vadd.f32 %v633_v62, %v601_v50  ;;  %v3009_v25 = vmul.f32 %v2180_v41, %v3724_v24  ;;  %2207 = vpow2.f32 %v577_v57  ;;  %v889_v32 = vmul.f32 1.442695, %v866_v38 }
 0x17b   : > { %v2184_v54 = vpop.eup %2183  ;;  %v1019_v0 = vmul.f32 %v2996_v3, %v665_v33  ;;  %v604_v6 = vmul.f32 0.0, %v2182_v9  ;;  %2209 = vpow2.f32 %v883_v46  ;;  %v937_v35 = vmul.f32 1.442695, %v914_v61 }
 0x17c   : > { %3723 = vst [vmem:[#allocation27_spill] sm:$0xff] %v3005_v34  ;;  %3725 = vst [vmem:[#allocation28_spill] sm:$0xff] %v3009_v25  ;;  %v3014_v40 = vpop.eup %2185  ;;  %v3727_v36 = vunpack.c.h.bf16 %v2809_v10  ;;  %2211 = vpow2.f32 %v931_v1  ;;  %v558_v24 = vsub.f32 %v2964_v42, %v2964_v42  ;;  %v3021_v57 = vmax.f32 %v2964_v42, %v799_v47 }
 0x17d   : > { %3726 = vst [vmem:[#allocation29_spill] sm:$0xff] %v3014_v40  ;;  %v2188_v7 = vpop.eup %2187  ;;  %v3023_v62 = vadd.f32 %v2180_v41, %v1019_v0  ;;  %v668_v38 = vadd.f32 %v2184_v54, %v604_v6  ;;  %2213 = vpow2.f32 %v535_v60  ;;  %v515_v46 = vsub.f32 -inf, %v2968_v48  ;;  %v3035_v60 = vpop.f32.mrf.mxu0 }
 0x17e   : > { %v636_v50 = vmul.f32 %v2184_v54, %v3727_v36  ;;  %v2190_v61 = vpop.eup %2189  ;;  %v3729_v10 = vunpack.c.h.bf16 %v2812_v11  ;;  %2215 = vpow2.f32 %v583_v63  ;;  %v579_v1 = vmul.f32 1.442695, %v558_v24 }
 0x17f   : > { %v2192_v36 = vpop.eup %2191  ;;  %v1022_v25 = vmul.f32 %v3014_v40, %v668_v38  ;;  %v602_v3 = vmul.f32 0.0, %v2190_v61  ;;  %2217 = vpow2.f32 %v889_v32  ;;  %v864_v41 = vsub.f32 %v2964_v42, %v3021_v57  ;;  %v1944_v61 = vpop.f32.mrf.mxu1 }
 0x180   : > { %v3026_v33 = vadd.f32 %v636_v50, %v604_v6  ;;  %v3030_v9 = vmul.f32 %v2188_v7, %v3729_v10  ;;  %v3037_v54 = vpop.eup %2193  ;;  %v3732_v0 = vunpack.c.h.bf16 %v2801_v4  ;;  %2219 = vpow2.f32 %v937_v35 }
 0x181   : > { %3731 = vst [vmem:[#allocation32_spill] sm:$0xff] %v3037_v54  ;;  %v912_v11 = vsub.f32 %v799_v47, %v3021_v57  ;;  %v541_v63 = vmul.f32 1.442695, %v515_v46  ;;  %v2196_v50 = vpop.eup %2195  ;;  %v3042_v24 = vadd.f32 %v2188_v7, %v1022_v25  ;;  %v666_v38 = vadd.f32 %v2192_v36, %v602_v3 }
 0x182   : > { %3728 = vst [vmem:[#allocation30_spill] sm:$0xff] %v3026_v33  ;;  %3730 = vst [vmem:[#allocation31_spill] sm:$0xff] %v3030_v9  ;;  %v634_v6 = vmul.f32 %v2192_v36, %v3732_v0  ;;  %2221 = vpow2.f32 %v531_v39  ;;  %v885_v32 = vmul.f32 1.442695, %v864_v41  ;;  %v2198_v10 = vpop.eup %2197  ;;  %v3734_v34 = vunpack.c.h.bf16 %v2804_v5  ;;  %v3053_v39 = vpop.f32.mrf.mxu0 }
 0x183   : > { %2223 = vpow2.f32 %v579_v1  ;;  %v933_v4 = vmul.f32 1.442695, %v912_v11  ;;  %v2200_v35 = vpop.eup %2199  ;;  %v1020_v47 = vmul.f32 %v3037_v54, %v666_v38  ;;  %v607_v46 = vmul.f32 0.0, %v2198_v10 }
 0x184   : > { %v3044_v42 = vadd.f32 %v634_v6, %v602_v3  ;;  %v3048_v9 = vmul.f32 %v2196_v50, %v3734_v34  ;;  %2225 = vpow2.f32 %v885_v32  ;;  %v563_v25 = vsub.f32 %v2968_v48, %v2968_v48  ;;  %v3055_v7 = vpop.eup %2201 }
 0x185   : > { %3736 = vst [vmem:[#allocation35_spill] sm:$0xff] %v3055_v7  ;;  %v3737_v3 = vunpack.c.l.bf16 %v2824_v14  ;;  %2227 = vpow2.f32 %v933_v4  ;;  %v3060_v5 = vmax.f32 %v2968_v48, %v1944_v61  ;;  %v513_v34 = vsub.f32 -inf, %v2977_v8  ;;  %v2204_v1 = vpop.eup %2203 }
 0x186   : > { %3733 = vst [vmem:[#allocation33_spill] sm:$0xff] %v3044_v42  ;;  %3735 = vst [vmem:[#allocation34_spill] sm:$0xff] %v3048_v9  ;;  %v3063_v41 = vadd.f32 %v2196_v50, %v1020_v47  ;;  %v671_v0 = vadd.f32 %v2200_v35, %v607_v46  ;;  %2229 = vpow2.f32 %v541_v63  ;;  %v589_v6 = vmul.f32 1.442695, %v563_v25  ;;  %v2206_v11 = vpop.eup %2205  ;;  %v812_v9 = vpop.f32.mrf.mxu1 }
 0x187   : > { %v639_v36 = vmul.f32 %v2200_v35, %v3737_v3  ;;  %v3739_v32 = vunpack.c.l.bf16 %v2827_v15  ;;  %v869_v4 = vsub.f32 %v2968_v48, %v3060_v5  ;;  %v917_v3 = vsub.f32 %v1944_v61, %v3060_v5  ;;  %v2208_v54 = vpop.eup %2207  ;;  %v3075_v35 = vpop.f32.mrf.mxu0 }
 0x188   : > { %v1025_v50 = vmul.f32 %v3055_v7, %v671_v0  ;;  %v605_v47 = vmul.f32 0.0, %v2206_v11  ;;  %2231 = vpow2.f32 %v589_v6  ;;  %v537_v63 = vmul.f32 1.442695, %v513_v34 }
 0x189   : > { %v3065_v38 = vadd.f32 %v639_v36, %v607_v46  ;;  %v3069_v10 = vmul.f32 %v2204_v1, %v3739_v32  ;;  %v3077_v46 = vpop.eup %2209  ;;  %v3742_v25 = vunpack.c.l.bf16 %v2815_v12  ;;  %v895_v32 = vmul.f32 1.442695, %v869_v4 }
 0x18a   : > { %3741 = vst [vmem:[#allocation38_spill] sm:$0xff] %v3077_v46  ;;  %v943_v42 = vmul.f32 1.442695, %v917_v3  ;;  %v561_v48 = vsub.f32 %v2977_v8, %v2977_v8  ;;  %v2212_v61 = vpop.eup %2211  ;;  %v3083_v51 = vadd.f32 %v2204_v1, %v1025_v50  ;;  %v669_v40 = vadd.f32 %v2208_v54, %v605_v47  ;;  %v3097_v1 = vpop.f32.mrf.mxu0 }
 0x18b   : > { %3738 = vst [vmem:[#allocation36_spill] sm:$0xff] %v3065_v38  ;;  %3740 = vst [vmem:[#allocation37_spill] sm:$0xff] %v3069_v10  ;;  %v637_v36 = vmul.f32 %v2208_v54, %v3742_v25  ;;  %2233 = vpow2.f32 %v537_v63  ;;  %v3086_v0 = vmax.f32 %v2977_v8, %v812_v9  ;;  %v2214_v34 = vpop.eup %2213  ;;  %v3744_v11 = vunpack.c.l.bf16 %v2818_v13 }
 0x18c   : > { %2235 = vpow2.f32 %v895_v32  ;;  %v585_v4 = vmul.f32 1.442695, %v561_v48  ;;  %v2216_v3 = vpop.eup %2215  ;;  %v1023_v25 = vmul.f32 %v3077_v46, %v669_v40  ;;  %v608_v44 = vmul.f32 0.0, %v2214_v34  ;;  %v1945_v34 = vpop.f32.mrf.mxu1 }
 0x18d   : > { %v3088_v6 = vadd.f32 %v637_v36, %v605_v47  ;;  %v3092_v33 = vmul.f32 %v2212_v61, %v3744_v11  ;;  %2237 = vpow2.f32 %v943_v42  ;;  %v867_v54 = vsub.f32 %v2977_v8, %v3086_v0  ;;  %v3099_v50 = vpop.eup %2217 }
 0x18e   : > { %3746 = vst [vmem:[#allocation41_spill] sm:$0xff] %v3099_v50  ;;  %v3747_v47 = vunpack.c.h.bf16 %v2824_v14  ;;  %2239 = vpow2.f32 %v585_v4  ;;  %v915_v36 = vsub.f32 %v812_v9, %v3086_v0  ;;  %v516_v32 = vsub.f32 -inf, %v2994_v45  ;;  %v2220_v48 = vpop.eup %2219 }
 0x18f   : > { %3743 = vst [vmem:[#allocation39_spill] sm:$0xff] %v3088_v6  ;;  %3745 = vst [vmem:[#allocation40_spill] sm:$0xff] %v3092_v33  ;;  %v3105_v11 = vadd.f32 %v2212_v61, %v1023_v25  ;;  %v672_v40 = vadd.f32 %v2216_v3, %v608_v44  ;;  %v891_v42 = vmul.f32 1.442695, %v867_v54  ;;  %v564_v8 = vsub.f32 %v2994_v45, %v2994_v45  ;;  %v2222_v59 = vpop.eup %2221  ;;  %v3116_v25 = vpop.f32.mrf.mxu0 }
 0x190   : > { %v640_v63 = vmul.f32 %v2216_v3, %v3747_v47  ;;  %v3749_v14 = vunpack.c.h.bf16 %v2827_v15  ;;  %v939_v4 = vmul.f32 1.442695, %v915_v36  ;;  %v543_v9 = vmul.f32 1.442695, %v516_v32  ;;  %v2224_v33 = vpop.eup %2223 }
 0x191   : > { %v1026_v31 = vmul.f32 %v3099_v50, %v672_v40  ;;  %v606_v61 = vmul.f32 0.0, %v2222_v59  ;;  %2241 = vpow2.f32 %v891_v42  ;;  %v591_v3 = vmul.f32 1.442695, %v564_v8  ;;  %v3118_v54 = vpop.eup %2225  ;;  %v815_v42 = vpop.f32.mrf.mxu1 }
 0x192   : > { %v3109_v30 = vadd.f32 %v640_v63, %v608_v44  ;;  %v3113_v47 = vmul.f32 %v2220_v48, %v3749_v14  ;;  %3751 = vst [vmem:[#allocation44_spill] sm:$0xff] %v3118_v54  ;;  %v638_v44 = vmul.f32 %v2224_v33, %v3752_v26  ;;  %2243 = vpow2.f32 %v939_v4  ;;  %v2228_v36 = vpop.eup %2227  ;;  %v3140_v46 = vpop.f32.mrf.mxu0 }
 0x193   : > { %v3123_v15 = vmax.f32 %v2994_v45, %v1945_v34  ;;  %v514_v63 = vsub.f32 -inf, %v3012_v49  ;;  %v3126_v32 = vadd.f32 %v2220_v48, %v1026_v31  ;;  %v670_v40 = vadd.f32 %v2224_v33, %v606_v61  ;;  %v2230_v8 = vpop.eup %2229 }
 0x194   : > { %3748 = vst [vmem:[#allocation42_spill] sm:$0xff] %v3109_v30  ;;  %3750 = vst [vmem:[#allocation43_spill] sm:$0xff] %v3113_v47  ;;  %2245 = vpow2.f32 %v543_v9  ;;  %v562_v59 = vsub.f32 %v3012_v49, %v3012_v49  ;;  %v3130_v14 = vadd.f32 %v638_v44, %v606_v61  ;;  %v3754_v12 = vunpack.c.h.bf16 %v2818_v13 }
 0x195   : > { %2247 = vpow2.f32 %v591_v3  ;;  %v870_v4 = vsub.f32 %v2994_v45, %v3123_v15  ;;  %v1024_v31 = vmul.f32 %v3118_v54, %v670_v40  ;;  %v611_v48 = vmul.f32 0.0, %v2230_v8  ;;  %v2232_v6 = vpop.eup %2231 }
 0x196   : > { %3753 = vst [vmem:[#allocation45_spill] sm:$0xff] %v3130_v14  ;;  %v3134_v26 = vmul.f32 %v2228_v36, %v3754_v12  ;;  %v918_v33 = vsub.f32 %v1945_v34, %v3123_v15  ;;  %v539_v9 = vmul.f32 1.442695, %v514_v63  ;;  %v587_v61 = vmul.f32 1.442695, %v562_v59 }
 0x197   : > { %v897_v27 = vmul.f32 1.442695, %v870_v4  ;;  %v3143_v44 = vmax.f32 %v3012_v49, %v815_v42  ;;  %v519_v13 = vsub.f32 -inf, %v3035_v60  ;;  %v3146_v3 = vadd.f32 %v2228_v36, %v1024_v31 }
 0x198   : > { %3755 = vst [vmem:[#allocation46_spill] sm:$0xff] %v3134_v26  ;;  %v3756_v45 = vunpack.c.l.bf16 %v2840_v18  ;;  %v675_v40 = vadd.f32 %v2232_v6, %v611_v48  ;;  %v945_v8 = vmul.f32 1.442695, %v918_v33  ;;  %v1948_v26 = vpop.f32.mrf.mxu1  ;;  %v2234_v34 = vpop.eup %2233  ;;  %v567_v31 = vsub.f32 %v3035_v60, %v3035_v60 }
 0x199   : > { %2249 = vpow2.f32 %v897_v27  ;;  %v868_v63 = vsub.f32 %v3012_v49, %v3143_v44  ;;  %v916_v59 = vsub.f32 %v815_v42, %v3143_v44  ;;  %v549_v4 = vmul.f32 1.442695, %v519_v13  ;;  %v3153_v54 = vpop.eup %2235 }
 0x19a   : > { %v643_v12 = vmul.f32 %v2232_v6, %v3756_v45  ;;  %v609_v36 = vmul.f32 0.0, %v2234_v34  ;;  %2251 = vpow2.f32 %v945_v8  ;;  %v3159_v6 = vpop.f32.mrf.mxu0  ;;  %v2238_v33 = vpop.eup %2237  ;;  %v1029_v27 = vmul.f32 %v3153_v54, %v675_v40 }
 0x19b   : > { %2253 = vpow2.f32 %v539_v9  ;;  %v893_v45 = vmul.f32 1.442695, %v868_v63  ;;  %v941_v49 = vmul.f32 1.442695, %v916_v59  ;;  %v2240_v47 = vpop.eup %2239  ;;  %v3757_v42 = vunpack.c.l.bf16 %v2843_v19  ;;  %v828_v8 = vpop.f32.mrf.mxu1 }
 0x19c   : > { %v3155_v14 = vadd.f32 %v643_v12, %v611_v48  ;;  %2255 = vpow2.f32 %v587_v61  ;;  %v597_v48 = vmul.f32 1.442695, %v567_v31  ;;  %v3167_v12 = vmax.f32 %v3035_v60, %v1948_v26  ;;  %v3177_v59 = vpop.f32.mrf.mxu0 }
 0x19d   : > { %v3164_v13 = vmul.f32 %v2238_v33, %v3757_v42  ;;  %v3169_v34 = vadd.f32 %v2238_v33, %v1029_v27  ;;  %v3759_v10 = vunpack.c.l.bf16 %v2831_v16  ;;  %v673_v40 = vadd.f32 %v2240_v47, %v609_v36 }
 0x19e   : > { %2257 = vpow2.f32 %v893_v45  ;;  %v873_v9 = vsub.f32 %v3035_v60, %v3167_v12  ;;  %v921_v63 = vsub.f32 %v1948_v26, %v3167_v12  ;;  %v517_v61 = vsub.f32 -inf, %v3053_v39  ;;  %v3179_v31 = vpop.eup %2241 }
 0x19f   : > { %3758 = vst [vmem:[#allocation47_spill] sm:$0xff] %v3164_v13  ;;  %v641_v50 = vmul.f32 %v2240_v47, %v3759_v10  ;;  %2259 = vpow2.f32 %v941_v49  ;;  %3760 = vst [vmem:[#allocation48_spill] sm:$0xff] %v3179_v31  ;;  %v565_v10 = vsub.f32 %v3053_v39, %v3053_v39  ;;  %v3186_v47 = vmax.f32 %v3053_v39, %v828_v8  ;;  %v2244_v33 = vpop.eup %2243 }
 0x1a0   : > { %2261 = vpow2.f32 %v549_v4  ;;  %v1027_v60 = vmul.f32 %v3179_v31, %v673_v40  ;;  %v903_v26 = vmul.f32 1.442695, %v873_v9  ;;  %v951_v27 = vmul.f32 1.442695, %v921_v63  ;;  %v3198_v9 = vpop.f32.mrf.mxu0 }
 0x1a1   : > { %v3181_v42 = vadd.f32 %v641_v50, %v609_v36  ;;  %2263 = vpow2.f32 %v597_v48  ;;  %v2246_v45 = vpop.eup %2245  ;;  %v3762_v49 = vunpack.c.l.bf16 %v2834_v17  ;;  %v545_v50 = vmul.f32 1.442695, %v517_v61  ;;  %v1949_v48 = vpop.f32.mrf.mxu1 }
 0x1a2   : > { %v593_v36 = vmul.f32 1.442695, %v565_v10  ;;  %v871_v4 = vsub.f32 %v3053_v39, %v3186_v47  ;;  %v2248_v28 = vpop.eup %2247  ;;  %v3195_v7 = vadd.f32 %v2244_v33, %v1027_v60  ;;  %v612_v38 = vmul.f32 0.0, %v2246_v45 }
 0x1a3   : > { %3761 = vst [vmem:[#allocation49_spill] sm:$0xff] %v3181_v42  ;;  %v3191_v30 = vmul.f32 %v2244_v33, %v3762_v49  ;;  %2265 = vpow2.f32 %v903_v26  ;;  %v919_v40 = vsub.f32 %v828_v8, %v3186_v47  ;;  %v3765_v63 = vunpack.c.h.bf16 %v2840_v18 }
 0x1a4   : > { %3764 = vst [vmem:[#allocation51_spill] sm:$0xff] %v3195_v7  ;;  %2267 = vpow2.f32 %v951_v27  ;;  %v899_v49 = vmul.f32 1.442695, %v871_v4  ;;  %v520_v61 = vsub.f32 -inf, %v3075_v35  ;;  %v676_v10 = vadd.f32 %v2248_v28, %v612_v38 }
 0x1a5   : > { %3763 = vst [vmem:[#allocation50_spill] sm:$0xff] %v3191_v30  ;;  %v644_v13 = vmul.f32 %v2248_v28, %v3765_v63  ;;  %2269 = vpow2.f32 %v545_v50  ;;  %v947_v39 = vmul.f32 1.442695, %v919_v40  ;;  %v568_v33 = vsub.f32 %v3075_v35, %v3075_v35  ;;  %v3215_v50 = vpop.f32.mrf.mxu0  ;;  %v831_v40 = vpop.f32.mrf.mxu1 }
 0x1a6   : > { %2271 = vpow2.f32 %v593_v36  ;;  %v551_v8 = vmul.f32 1.442695, %v520_v61  ;;  %v3208_v26 = vmax.f32 %v3075_v35, %v1949_v48  ;;  %v3210_v45 = vpop.eup %2249  ;;  %v518_v27 = vsub.f32 -inf, %v3097_v1 }
 0x1a7   : > { %v3205_v60 = vadd.f32 %v644_v13, %v612_v38  ;;  %2273 = vpow2.f32 %v899_v49  ;;  %v599_v18 = vmul.f32 1.442695, %v568_v33  ;;  %v566_v28 = vsub.f32 %v3097_v1, %v3097_v1  ;;  %v2252_v4 = vpop.eup %2251 }
 0x1a8   : > { %v1030_v38 = vmul.f32 %v3210_v45, %v676_v10  ;;  %2275 = vpow2.f32 %v947_v39  ;;  %v874_v13 = vsub.f32 %v3075_v35, %v3208_v26  ;;  %v922_v36 = vsub.f32 %v1949_v48, %v3208_v26  ;;  %v2254_v63 = vpop.eup %2253 }
 0x1a9   : > { %v3766_v49 = vunpack.c.h.bf16 %v2843_v19  ;;  %2277 = vpow2.f32 %v551_v8  ;;  %v547_v33 = vmul.f32 1.442695, %v518_v27  ;;  %v595_v30 = vmul.f32 1.442695, %v566_v28  ;;  %v2256_v7 = vpop.eup %2255 }
 0x1aa   : > { %v3225_v31 = vadd.f32 %v2252_v4, %v1030_v38  ;;  %v610_v42 = vmul.f32 0.0, %v2254_v63  ;;  %2279 = vpow2.f32 %v599_v18  ;;  %v905_v10 = vmul.f32 1.442695, %v874_v13 }
 0x1ab   : > { %v3223_v61 = vmul.f32 %v2252_v4, %v3766_v49  ;;  %v3227_v39 = vpop.eup %2257  ;;  %v3770_v35 = vunpack.c.h.bf16 %v2831_v16  ;;  %v953_v29 = vmul.f32 1.442695, %v922_v36  ;;  %2281 = vpow2.f32 %v547_v33  ;;  %v3234_v49 = vpop.f32.mrf.mxu0 }
 0x1ac   : > { %3768 = vst [vmem:[#allocation53_spill] sm:$0xff] %v3225_v31  ;;  %3769 = vst [vmem:[#allocation54_spill] sm:$0xff] %v3227_v39  ;;  %v3232_v19 = vmax.f32 %v3097_v1, %v831_v40  ;;  %v2260_v8 = vpop.eup %2259  ;;  %v674_v27 = vadd.f32 %v2256_v7, %v610_v42  ;;  %2283 = vpow2.f32 %v905_v10  ;;  %v1215_v28 = vmax.f32 %v2939_v58, %v3116_v25 }
 0x1ad   : > { %3767 = vst [vmem:[#allocation52_spill] sm:$0xff] %v3223_v61  ;;  %v642_v48 = vmul.f32 %v2256_v7, %v3770_v35  ;;  %v1213_v18 = vmax.f32 %v2948_v55, %v3140_v46  ;;  %v2262_v4 = vpop.eup %2261  ;;  %v3772_v16 = vunpack.c.h.bf16 %v2834_v17  ;;  %2285 = vpow2.f32 %v953_v29 }
 0x1ae   : > { %v872_v36 = vsub.f32 %v3097_v1, %v3232_v19  ;;  %v2264_v63 = vpop.eup %2263  ;;  %v1028_v7 = vmul.f32 %v3227_v39, %v674_v27  ;;  %v615_v33 = vmul.f32 0.0, %v2262_v4  ;;  %2287 = vpow2.f32 %v595_v30 }
 0x1af   : > { %v3240_v38 = vadd.f32 %v642_v48, %v610_v42  ;;  %v3244_v13 = vmul.f32 %v2260_v8, %v3772_v16  ;;  %v920_v10 = vsub.f32 %v831_v40, %v3232_v19  ;;  %v3774_v35 = vunpack.c.l.bf16 %v2856_v22  ;;  %v3254_v16 = vpop.f32.mrf.mxu0 }
 0x1b0   : > { %v901_v42 = vmul.f32 1.442695, %v872_v36  ;;  %v1231_v48 = vsub.f32 %v2939_v58, %v1215_v28  ;;  %v1279_v17 = vsub.f32 %v3116_v25, %v1215_v28  ;;  %v3256_v29 = vpop.eup %2265  ;;  %v3258_v1 = vadd.f32 %v2260_v8, %v1028_v7 }
 0x1b1   : > { %3771 = vst [vmem:[#allocation55_spill] sm:$0xff] %v3240_v38  ;;  %3773 = vst [vmem:[#allocation56_spill] sm:$0xff] %v3244_v13  ;;  %v647_v31 = vmul.f32 %v2264_v63, %v3774_v35  ;;  %v679_v13 = vadd.f32 %v2264_v63, %v615_v33  ;;  %v949_v27 = vmul.f32 1.442695, %v920_v10  ;;  %v1229_v30 = vsub.f32 %v2948_v55, %v1213_v18  ;;  %v2268_v4 = vpop.eup %2267 }
 0x1b2   : > { %3775 = vst [vmem:[#allocation57_spill] sm:$0xff] %v3258_v1  ;;  %2289 = vpow2.f32 %v901_v42  ;;  %v1249_v35 = vmul.f32 1.442695, %v1231_v48  ;;  %v1297_v36 = vmul.f32 1.442695, %v1279_v17  ;;  %v2270_v39 = vpop.eup %2269  ;;  %v3776_v58 = vunpack.c.l.bf16 %v2859_v23 }
 0x1b3   : > { %v3261_v40 = vadd.f32 %v647_v31, %v615_v33  ;;  %v1033_v28 = vmul.f32 %v3256_v29, %v679_v13  ;;  %2291 = vpow2.f32 %v949_v27  ;;  %v1245_v8 = vmul.f32 1.442695, %v1229_v30  ;;  %v2272_v7 = vpop.eup %2271  ;;  %v3271_v33 = vpop.f32.mrf.mxu0 }
 0x1b4   : > { %v3265_v25 = vmul.f32 %v2268_v4, %v3776_v58  ;;  %v613_v63 = vmul.f32 0.0, %v2270_v39  ;;  %2293 = vpow2.f32 %v1249_v35  ;;  %v1277_v55 = vsub.f32 %v3140_v46, %v1213_v18  ;;  %v3273_v10 = vpop.eup %2273 }
 0x1b5   : > { %v1216_v31 = vmax.f32 %v2952_v43, %v3159_v6  ;;  %v3275_v42 = vadd.f32 %v2268_v4, %v1033_v28  ;;  %v3778_v48 = vunpack.c.l.bf16 %v2847_v20  ;;  %2295 = vpow2.f32 %v1297_v36  ;;  %v2276_v39 = vpop.eup %2275 }
 0x1b6   : > { %v1214_v13 = vmax.f32 %v2956_v53, %v3177_v59  ;;  %v677_v27 = vadd.f32 %v2272_v7, %v613_v63  ;;  %2297 = vpow2.f32 %v1245_v8  ;;  %v1293_v46 = vmul.f32 1.442695, %v1277_v55  ;;  %v2278_v30 = vpop.eup %2277 }
 0x1b7   : > { %3777 = vst [vmem:[#allocation58_spill] sm:$0xff] %v3275_v42  ;;  %v645_v17 = vmul.f32 %v2272_v7, %v3778_v48  ;;  %v1232_v18 = vsub.f32 %v2952_v43, %v1216_v31  ;;  %v3779_v58 = vunpack.c.l.bf16 %v2850_v21  ;;  %v1280_v28 = vsub.f32 %v3159_v6, %v1216_v31  ;;  %v2280_v48 = vpop.eup %2279  ;;  %v3291_v7 = vpop.f32.mrf.mxu0 }
 0x1b8   : > { %v1230_v36 = vsub.f32 %v2956_v53, %v1214_v13  ;;  %v1031_v42 = vmul.f32 %v3273_v10, %v677_v27  ;;  %v616_v1 = vmul.f32 0.0, %v2278_v30  ;;  %2299 = vpow2.f32 %v1293_v46  ;;  %v2282_v43 = vpop.eup %2281 }
 0x1b9   : > { %v3282_v35 = vadd.f32 %v645_v17, %v613_v63  ;;  %v3286_v4 = vmul.f32 %v2276_v39, %v3779_v58  ;;  %v1251_v8 = vmul.f32 1.442695, %v1232_v18  ;;  %v3780_v63 = vunpack.c.h.bf16 %v2856_v22  ;;  %v3296_v61 = vpop.eup %2283 }
 0x1ba   : > { %v1299_v17 = vmul.f32 1.442695, %v1280_v28  ;;  %v1247_v38 = vmul.f32 1.442695, %v1230_v36  ;;  %v1278_v58 = vsub.f32 %v3177_v59, %v1214_v13  ;;  %v3298_v6 = vadd.f32 %v2276_v39, %v1031_v42  ;;  %v2286_v27 = vpop.eup %2285  ;;  %v3311_v13 = vpop.f32.mrf.mxu0 }
 0x1bb   : > { %v648_v55 = vmul.f32 %v2280_v48, %v3780_v63  ;;  %v680_v53 = vadd.f32 %v2280_v48, %v616_v1  ;;  %v614_v31 = vmul.f32 0.0, %v2282_v43  ;;  %2301 = vpow2.f32 %v1251_v8  ;;  %v2288_v30 = vpop.eup %2287 }
 0x1bc   : > { %2303 = vpow2.f32 %v1299_v17  ;;  %v1295_v18 = vmul.f32 1.442695, %v1278_v58  ;;  %v1219_v22 = vmax.f32 %v2962_v56, %v3198_v9  ;;  %v3781_v28 = vunpack.c.h.bf16 %v2859_v23 }
 0x1bd   : > { %v3300_v46 = vadd.f32 %v648_v55, %v616_v1  ;;  %v1034_v59 = vmul.f32 %v3296_v61, %v680_v53  ;;  %2305 = vpow2.f32 %v1247_v38  ;;  %v1217_v42 = vmax.f32 %v2970_v2, %v3215_v50 }
 0x1be   : > { %v3306_v36 = vmul.f32 %v2286_v27, %v3781_v28  ;;  %v3782_v1 = vunpack.c.h.bf16 %v2847_v20  ;;  %v678_v48 = vadd.f32 %v2288_v30, %v614_v31  ;;  %2307 = vpow2.f32 %v1295_v18 }
 0x1bf   : > { %v1235_v8 = vsub.f32 %v2962_v56, %v1219_v22  ;;  %v3316_v43 = vadd.f32 %v2286_v27, %v1034_v59  ;;  %v1283_v23 = vsub.f32 %v3198_v9, %v1219_v22  ;;  %v1233_v63 = vsub.f32 %v2970_v2, %v1217_v42  ;;  %v3321_v55 = vpop.eup %2289  ;;  %v3330_v2 = vpop.f32.mrf.mxu0 }
 0x1c0   : > { %v646_v39 = vmul.f32 %v2288_v30, %v3782_v1  ;;  %v1281_v38 = vsub.f32 %v3215_v50, %v1217_v42  ;;  %v1220_v20 = vmax.f32 %v2990_v37, %v3234_v49  ;;  %v1218_v53 = vmax.f32 %v3021_v57, %v3254_v16  ;;  %v2292_v56 = vpop.eup %2291 }
 0x1c1   : > { %v1257_v58 = vmul.f32 1.442695, %v1235_v8  ;;  %v1032_v27 = vmul.f32 %v3321_v55, %v678_v48  ;;  %v1305_v18 = vmul.f32 1.442695, %v1283_v23  ;;  %v1253_v9 = vmul.f32 1.442695, %v1233_v63  ;;  %v3332_v50 = vpop.eup %2293 }
 0x1c2   : > { %v3323_v17 = vadd.f32 %v646_v39, %v614_v31  ;;  %v1301_v22 = vmul.f32 1.442695, %v1281_v38  ;;  %v3783_v31 = vunpack.c.h.bf16 %v2850_v21  ;;  %v1236_v28 = vsub.f32 %v2990_v37, %v1220_v20  ;;  %v3340_v42 = vpop.eup %2295 }
 0x1c3   : > { %2309 = vpow2.f32 %v1257_v58  ;;  %v1284_v59 = vsub.f32 %v3234_v49, %v1220_v20  ;;  %v3342_v1 = vadd.f32 %v2292_v56, %v1032_v27  ;;  %v1391_v39 = vmul.f32 %v3332_v50, %v3003_v52  ;;  %v3347_v8 = vpop.eup %2297  ;;  %v1980_v58 = vpop.f32.mrf.mxu0 }
 0x1c4   : > { %v3336_v30 = vmul.f32 %v2292_v56, %v3783_v31  ;;  %2311 = vpow2.f32 %v1305_v18  ;;  %v1234_v48 = vsub.f32 %v3021_v57, %v1218_v53  ;;  %v1259_v21 = vmul.f32 1.442695, %v1236_v28 }
 0x1c5   : > { %2313 = vpow2.f32 %v1253_v9  ;;  %v1307_v23 = vmul.f32 1.442695, %v1284_v59  ;;  %v1282_v63 = vsub.f32 %v3254_v16, %v1218_v53  ;;  %v1407_v37 = vadd.f32 %v3340_v42, %v1391_v39  ;;  %v3353_v20 = vpop.eup %2299 }
 0x1c6   : > { %v1389_v49 = vmul.f32 %v3347_v8, %v3023_v62  ;;  %2315 = vpow2.f32 %v1301_v22  ;;  %v1255_v38 = vmul.f32 1.442695, %v1234_v48  ;;  %v1223_v57 = vmax.f32 %v3060_v5, %v3271_v33  ;;  %v1198_v48 = vpop.f32.mrf.mxu0 }
 0x1c7   : > { %2317 = vpow2.f32 %v1259_v21  ;;  %v1303_v52 = vmul.f32 1.442695, %v1282_v63  ;;  %v1221_v56 = vmax.f32 %v3086_v0, %v3291_v7  ;;  %v1224_v53 = vmax.f32 %v3123_v15, %v3311_v13 }
 0x1c8   : > { %2319 = vrcp.f32 %v1407_v37  ;;  %v1405_v16 = vadd.f32 %v3353_v20, %v1389_v49  ;;  %v1222_v62 = vmax.f32 %v3143_v44, %v3330_v2  ;;  %v3364_v27 = vpop.eup %2301  ;;  %v1239_v18 = vsub.f32 %v3060_v5, %v1223_v57 }
 0x1c9   : > { %2321 = vpow2.f32 %v1307_v23  ;;  %v1287_v9 = vsub.f32 %v3271_v33, %v1223_v57  ;;  %v1237_v22 = vsub.f32 %v3086_v0, %v1221_v56  ;;  %v3369_v31 = vpop.eup %2303  ;;  %v1392_v28 = vmul.f32 %v3364_v27, %v3042_v24 }
 0x1ca   : > { %2323 = vrcp.f32 %v1405_v16  ;;  %v1285_v59 = vsub.f32 %v3291_v7, %v1221_v56  ;;  %v1240_v39 = vsub.f32 %v3123_v15, %v1224_v53  ;;  %v3375_v21 = vpop.eup %2305  ;;  %v1265_v23 = vmul.f32 1.442695, %v1239_v18  ;;  %v1981_v16 = vpop.f32.mrf.mxu0 }
 0x1cb   : > { %2325 = vpow2.f32 %v1255_v38  ;;  %v1313_v5 = vmul.f32 1.442695, %v1287_v9  ;;  %v1261_v63 = vmul.f32 1.442695, %v1237_v22  ;;  %v3377_v33 = vpop.eup %2307  ;;  %v1408_v0 = vadd.f32 %v3369_v31, %v1392_v28 }
 0x1cc   : > { %v1390_v37 = vmul.f32 %v3375_v21, %v3063_v41  ;;  %2327 = vpow2.f32 %v1303_v52  ;;  %v1309_v24 = vmul.f32 1.442695, %v1285_v59  ;;  %v1267_v7 = vmul.f32 1.442695, %v1240_v39 }
 0x1cd   : > { %2329 = vpow2.f32 %v1265_v23  ;;  %v1288_v15 = vsub.f32 %v3311_v13, %v1224_v53  ;;  %v1238_v49 = vsub.f32 %v3143_v44, %v1222_v62  ;;  %v1286_v57 = vsub.f32 %v3330_v2, %v1222_v62 }
 0x1ce   : > { %2331 = vrcp.f32 %v1408_v0  ;;  %v1406_v38 = vadd.f32 %v3377_v33, %v1390_v37  ;;  %v1227_v56 = vmax.f32 %v3167_v12, %v1980_v58  ;;  %v1225_v41 = vmax.f32 %v3186_v47, %v1198_v48  ;;  %v1201_v0 = vpop.f32.mrf.mxu0 }
 0x1cf   : > { %2333 = vpow2.f32 %v1313_v5  ;;  %v1315_v18 = vmul.f32 1.442695, %v1288_v15  ;;  %v1263_v9 = vmul.f32 1.442695, %v1238_v49  ;;  %v1311_v22 = vmul.f32 1.442695, %v1286_v57 }
 0x1d0   : > { %v3388_v52 = vpop.eup %2309  ;;  %2335 = vrcp.f32 %v1406_v38  ;;  %v1243_v13 = vsub.f32 %v3167_v12, %v1227_v56  ;;  %v1291_v44 = vsub.f32 %v1980_v58, %v1227_v56  ;;  %v1241_v62 = vsub.f32 %v3186_v47, %v1225_v41  ;;  %v2133_v15 = vld [vmem:[#allocation8 + $0x38] sm:$0xff]  }
 0x1d1   : > { %v3391_v53 = vpop.eup %2311  ;;  %v1395_v2 = vmul.f32 %v3388_v52, %v3083_v51  ;;  %2337 = vpow2.f32 %v1261_v63  ;;  %v1289_v28 = vsub.f32 %v1198_v48, %v1225_v41  ;;  %v1228_v5 = vmax.f32 %v3208_v26, %v1981_v16 }
 0x1d2   : > { %v3396_v59 = vpop.eup %2313  ;;  %2339 = vpow2.f32 %v1309_v24  ;;  %v1273_v39 = vmul.f32 1.442695, %v1243_v13  ;;  %v1321_v23 = vmul.f32 1.442695, %v1291_v44  ;;  %v1269_v51 = vmul.f32 1.442695, %v1241_v62 }
 0x1d3   : > { %v3399_v37 = vpop.eup %2315  ;;  %v1411_v12 = vadd.f32 %v3391_v53, %v1395_v2  ;;  %v1393_v58 = vmul.f32 %v3396_v59, %v3105_v11  ;;  %2341 = vpow2.f32 %v1267_v7  ;;  %v1317_v47 = vmul.f32 1.442695, %v1289_v28 }
 0x1d4   : > { %v3404_v63 = vpop.eup %2317  ;;  %2343 = vpow2.f32 %v1315_v18  ;;  %v1244_v48 = vsub.f32 %v3208_v26, %v1228_v5  ;;  %v1292_v24 = vsub.f32 %v1981_v16, %v1228_v5  ;;  %v1226_v11 = vmax.f32 %v3232_v19, %v1201_v0 }
 0x1d5   : > { %v3407_v49 = vpop.eup %2319  ;;  %2345 = vrcp.f32 %v1411_v12  ;;  %v1409_v38 = vadd.f32 %v3399_v37, %v1393_v58  ;;  %v1396_v57 = vmul.f32 %v3404_v63, %v3126_v32  ;;  %v2581_v44 = vmov 0.0  }
 0x1d6   : > { %v3413_v7 = vpop.eup %2321  ;;  %2347 = vpow2.f32 %v1263_v9  ;;  %v1275_v56 = vmul.f32 1.442695, %v1244_v48  ;;  %v3415_v18 = vmul.f32 1.442695, %v1292_v24  ;;  %v1242_v16 = vsub.f32 %v3232_v19, %v1226_v11  ;;  %1982 = vmatprep.subr.bf16.mxu1 %v2581_v44  ;;  %2002 = vmatprep.subr.bf16.mxu0 %v2581_v44  ;;  %v2134_v19 = vld [vmem:[#allocation8 + $0x30] sm:$0xff]   ;;  %v3786_v24 = vld [vmem:[#allocation49_spill] sm:$0xff] }
 0x1d7   : > { %v3417_v41 = vpop.eup %2323  ;;  %2349 = vrcp.f32 %v1409_v38  ;;  %v1412_v26 = vadd.f32 %v3413_v7, %v1396_v57  ;;  %v1290_v13 = vsub.f32 %v1201_v0, %v1226_v11  ;;  %v969_v9 = vmul.f32 %v3256_v29, %v3261_v40  ;;  %2003 = vmatpush3.bf16.msra.mxu0 %v2133_v15  ;;  %v3789_v38 = vld [vmem:[#allocation52_spill] sm:$0xff]  ;;  %v3791_v57 = vld [vmem:[#allocation54_spill] sm:$0xff]  ;;  %1998 = vmatprep.mubr.msk.bf16.mxu1 %vm2582_vm0, %v2581_v44 }
 0x1d8   : > { %v3423_v32 = vpop.eup %2325  ;;  %2351 = vpow2.f32 %v1311_v22  ;;  %v970_v2 = vmul.f32 %v3296_v61, %v3300_v46  ;;  %v967_v62 = vmul.f32 %v3273_v10, %v3282_v35  ;;  %v1271_v0 = vmul.f32 1.442695, %v1242_v16  ;;  %2004 = vmatprep.subr.bf16.mxu0 %v2581_v44  ;;  %v3792_v16 = vld [vmem:[#allocation51_spill] sm:$0xff]  ;;  %2018 = vmatprep.mubr.msk.bf16.mxu0 %vm2582_vm0, %v2581_v44 }
 0x1d9   : > { %v3431_v28 = vpop.eup %2327  ;;  %2353 = vrcp.f32 %v1412_v26  ;;  %v1394_v5 = vmul.f32 %v3423_v32, %v3146_v3  ;;  %v1319_v12 = vmul.f32 1.442695, %v1290_v13  ;;  %v3437_v29 = vadd.f32 %v3265_v25, %v969_v9  ;;  %v3793_v9 = vld [vmem:[#allocation50_spill] sm:$0xff] }
 0x1da   : > { %v2330_v22 = vpop.eup %2329  ;;  %2355 = vpow2.f32 %v1273_v39  ;;  %v3440_v61 = vadd.f32 %v3306_v36, %v970_v2  ;;  %v968_v40 = vmul.f32 %v3321_v55, %v3323_v17  ;;  %v3449_v46 = vadd.f32 %v3286_v4, %v967_v62  ;;  %v2135_v17 = vld [vmem:[#allocation8 + $0x28] sm:$0xff]   ;;  %v3794_v62 = vld [vmem:[#allocation36_spill] sm:$0xff] }
 0x1db   : > { %v3444_v10 = vpop.eup %2331  ;;  %v1410_v35 = vadd.f32 %v3431_v28, %v1394_v5  ;;  %v1399_v3 = vmul.f32 %v2330_v22, %v3169_v34  ;;  %2357 = vpow2.f32 %v1321_v23  ;;  %v965_v36 = vmul.f32 %v3153_v54, %v3155_v14  ;;  %2005 = vmatpush3.bf16.msra.mxu0 %v2134_v19  ;;  %v3784_v23 = vld [vmem:[#allocation20_spill] sm:$0xff]  ;;  %v3788_v54 = vld [vmem:[#allocation47_spill] sm:$0xff] }
 0x1dc   : > { %v2334_v39 = vpop.eup %2333  ;;  %2359 = vpow2.f32 %v1269_v51  ;;  %v3452_v25 = vadd.f32 %v3336_v30, %v968_v40  ;;  %v966_v55 = vmul.f32 %v3210_v45, %v3205_v60  ;;  %v3785_v4 = vunpack.c.l.bf16 %v3784_v23  ;;  %v3787_v51 = vld [vmem:[#allocation48_spill] sm:$0xff]  ;;  %2006 = vmatprep.subr.bf16.mxu0 %v2581_v44  ;;  %v3790_v45 = vld [vmem:[#allocation55_spill] sm:$0xff] }
 0x1dd   : > { %v3458_v58 = vpop.eup %2335  ;;  %2361 = vrcp.f32 %v1410_v35  ;;  %v1415_v34 = vadd.f32 %v2334_v39, %v1399_v3  ;;  %v963_v15 = vmul.f32 %v3787_v51, %v3786_v24  ;;  %v1013_v14 = vadd.f32 %v3788_v54, %v965_v36  ;;  %v3795_v19 = vld [vmem:[#allocation35_spill] sm:$0xff] }
 0x1de   : > { %v1367_v48 = vmul.f32 %v2334_v39, %v3785_v4  ;;  %v2338_v30 = vpop.eup %2337  ;;  %2363 = vpow2.f32 %v1317_v47  ;;  %v1014_v60 = vadd.f32 %v3789_v38, %v966_v55  ;;  %v964_v11 = vmul.f32 %v3791_v57, %v3790_v45  ;;  %v3796_v47 = vld [vmem:[#allocation56_spill] sm:$0xff]  ;;  %v3797_v39 = vld [vmem:[#allocation19_spill] sm:$0xff]  ;;  %v2136_v4 = vld [vmem:[#allocation8 + $0x20] sm:$0xff]  }
 0x1df   : > { %v2340_v26 = vpop.eup %2339  ;;  %2365 = vrcp.f32 %v1415_v34  ;;  %v1397_v13 = vmul.f32 %v2338_v30, %v3792_v16  ;;  %v1011_v2 = vadd.f32 %v3793_v9, %v963_v15  ;;  %v961_v5 = vmul.f32 %v3795_v19, %v3794_v62  ;;  %2007 = vmatpush3.bf16.msra.mxu0 %v2135_v17  ;;  %v3799_v34 = vld [vmem:[#allocation53_spill] sm:$0xff] }
 0x1e0   : > { %v2342_v40 = vpop.eup %2341  ;;  %2367 = vpow2.f32 %v1275_v56  ;;  %v1335_v35 = vmul.f32 %v2330_v22, %v1013_v14  ;;  %v1012_v3 = vadd.f32 %v3796_v47, %v964_v11  ;;  %v3798_v36 = vunpack.c.l.bf16 %v3797_v39  ;;  %2008 = vmatprep.subr.bf16.mxu0 %v2581_v44  ;;  %v3801_v11 = vld [vmem:[#allocation42_spill] sm:$0xff]  ;;  %v3802_v16 = vld [vmem:[#allocation41_spill] sm:$0xff] }
 0x1e1   : > { %v2344_v24 = vpop.eup %2343  ;;  %v1413_v51 = vadd.f32 %v2340_v26, %v1397_v13  ;;  %v1400_v54 = vmul.f32 %v2342_v40, %v3799_v34  ;;  %2369 = vpow2.f32 %v3415_v18  ;;  %v1336_v15 = vmul.f32 %v2342_v40, %v1014_v60  ;;  %v3803_v13 = vld [vmem:[#allocation37_spill] sm:$0xff] }
 0x1e2   : > { %v1365_v55 = vmul.f32 %v2340_v26, %v3798_v36  ;;  %v2346_v38 = vpop.eup %2345  ;;  %2371 = vpow2.f32 %v1271_v0  ;;  %v3800_v56 = vunpack.c.h.bf16 %v3784_v23  ;;  %v1383_v14 = vadd.f32 %v1367_v48, %v1335_v35  ;;  %v3804_v18 = vld [vmem:[#allocation57_spill] sm:$0xff]  ;;  %v2137_v23 = vld [vmem:[#allocation8 + $0x18] sm:$0xff]  }
 0x1e3   : > { %v1333_v45 = vmul.f32 %v2338_v30, %v1011_v2  ;;  %v2348_v57 = vpop.eup %2347  ;;  %2373 = vrcp.f32 %v1413_v51  ;;  %v1416_v17 = vadd.f32 %v2344_v24, %v1400_v54  ;;  %v962_v26 = vmul.f32 %v3802_v16, %v3801_v11  ;;  %2009 = vmatpush3.bf16.msra.mxu0 %v2136_v4  ;;  %v3805_v2 = vld [vmem:[#allocation43_spill] sm:$0xff] }
 0x1e4   : > { %v1368_v22 = vmul.f32 %v2344_v24, %v3800_v56  ;;  %v1009_v9 = vadd.f32 %v3803_v13, %v961_v5  ;;  %v3484_v62 = vpop.eup %2349  ;;  %v1398_v60 = vmul.f32 %v2348_v57, %v3804_v18  ;;  %2375 = vpow2.f32 %v1319_v12  ;;  %2010 = vmatprep.subr.bf16.mxu0 %v2581_v44  ;;  %v3807_v24 = vld [vmem:[#allocation18_spill] sm:$0xff] }
 0x1e5   : > { %v1334_v0 = vmul.f32 %v2348_v57, %v1012_v3  ;;  %v2352_v48 = vpop.eup %2351  ;;  %2377 = vrcp.f32 %v1416_v17  ;;  %v3489_v30 = vadd.f32 %v1365_v55, %v1333_v45  ;;  %v1010_v40 = vadd.f32 %v3805_v2, %v962_v26  ;;  %v3813_v45 = vld [vmem:[#allocation44_spill] sm:$0xff]  ;;  %v3814_v17 = vld [vmem:[#allocation17_spill] sm:$0xff]  ;;  %v3817_v18 = vld [vmem:[#allocation22_spill] sm:$0xff] }
 0x1e6   : > { %v3487_v19 = vadd.f32 %v1368_v22, %v1336_v15  ;;  %v1331_v35 = vmul.f32 %v3388_v52, %v1009_v9  ;;  %v2354_v5 = vpop.eup %2353  ;;  %v1414_v47 = vadd.f32 %v2352_v48, %v1398_v60  ;;  %v3806_v36 = vunpack.c.h.bf16 %v3797_v39  ;;  %v3810_v15 = vld [vmem:[#allocation39_spill] sm:$0xff]  ;;  %v3811_v52 = vld [vmem:[#allocation38_spill] sm:$0xff]  ;;  %v3812_v22 = vld [vmem:[#allocation45_spill] sm:$0xff] }
 0x1e7   : > { %v3808_v51 = vunpack.c.l.bf16 %v3807_v24  ;;  %v3809_v4 = vunpack.c.h.bf16 %v3807_v24  ;;  %v2356_v34 = vpop.eup %2355  ;;  %v1332_v54 = vmul.f32 %v3404_v63, %v1010_v40  ;;  %v959_v56 = vmul.f32 %v3811_v52, %v3810_v15  ;;  %2011 = vmatpush3.bf16.msra.mxu0 %v2137_v23  ;;  %v2138_v63 = vld [vmem:[#allocation8 + $0x10] sm:$0xff]  }
 0x1e8   : > { %v1366_v12 = vmul.f32 %v2352_v48, %v3806_v36  ;;  %v960_v57 = vmul.f32 %v3813_v45, %v3812_v22  ;;  %v3815_v39 = vunpack.c.l.bf16 %v3814_v17  ;;  %v2358_v16 = vpop.eup %2357  ;;  %2379 = vrcp.f32 %v1414_v47  ;;  %v3819_v36 = vld [vmem:[#allocation40_spill] sm:$0xff]  ;;  %2012 = vmatprep.subr.bf16.mxu0 %v2581_v44 }
 0x1e9   : > { %v1363_v3 = vmul.f32 %v3391_v53, %v3808_v51  ;;  %v1364_v55 = vmul.f32 %v3413_v7, %v3809_v4  ;;  %v3816_v53 = vld [vmem:[#allocation58_spill] sm:$0xff]  ;;  %v1339_v13 = vmul.f32 %v2356_v34, %v3437_v29  ;;  %v2360_v9 = vpop.eup %2359  ;;  %v3818_v60 = vunpack.c.l.bf16 %v3817_v18 }
 0x1ea   : > { %v1361_v11 = vmul.f32 %v3399_v37, %v3815_v39  ;;  %v1403_v26 = vmul.f32 %v2356_v34, %v3816_v53  ;;  %v3512_v7 = vadd.f32 %v1366_v12, %v1334_v0  ;;  %v1007_v24 = vadd.f32 %v3819_v36, %v959_v56  ;;  %v2362_v37 = vpop.eup %2361  ;;  %v3820_v0 = vld [vmem:[#allocation46_spill] sm:$0xff] }
 0x1eb   : > { %v1371_v48 = vmul.f32 %v2358_v16, %v3818_v60  ;;  %v1379_v2 = vadd.f32 %v1363_v3, %v1331_v35  ;;  %v1380_v40 = vadd.f32 %v1364_v55, %v1332_v54  ;;  %v1401_v51 = vmul.f32 %v2360_v9, %v3298_v6  ;;  %v2364_v23 = vpop.eup %2363  ;;  %v3821_v54 = vld [vmem:[#allocation21_spill] sm:$0xff]  ;;  %2013 = vmatpush3.bf16.msra.mxu0 %v2138_v63 }
 0x1ec   : > { %v1419_v47 = vadd.f32 %v2358_v16, %v1403_v26  ;;  %v1337_v29 = vmul.f32 %v2360_v9, %v3449_v46  ;;  %v1008_v12 = vadd.f32 %v3820_v0, %v960_v57  ;;  %v1329_v35 = vmul.f32 %v3396_v59, %v1007_v24  ;;  %v2366_v3 = vpop.eup %2365  ;;  %v2139_v46 = vld [vmem:[#allocation8 + $0x8] sm:$0xff]   ;;  %2014 = vmatprep.subr.bf16.mxu0 %v2581_v44 }
 0x1ed   : > { %v3521_v4 = vadd.f32 %v1371_v48, %v1339_v13  ;;  %v3523_v34 = vmul.f32 %v2346_v38, %v1379_v2  ;;  %v3525_v15 = vmul.f32 %v2354_v5, %v1380_v40  ;;  %v1417_v55 = vadd.f32 %v2364_v23, %v1401_v51  ;;  %v2368_v22 = vpop.eup %2367  ;;  %v3828_v40 = vld [vmem:[#allocation29_spill] sm:$0xff] }
 0x1ee   : > { %2381 = vrcp.f32 %v1419_v47  ;;  %v3822_v52 = vunpack.c.l.bf16 %v3821_v54  ;;  %v1330_v6 = vmul.f32 %v3423_v32, %v1008_v12  ;;  %v3531_v45 = vmul.f32 %v2366_v3, %v1383_v14  ;;  %v2370_v39 = vpop.eup %2369 }
 0x1ef   : > { %v1457_v38 = vpack.c.bf16 %v3525_v15, %v3523_v34  ;;  %v3823_v5 = vunpack.c.h.bf16 %v3814_v17  ;;  %v1377_v57 = vadd.f32 %v1361_v11, %v1329_v35  ;;  %2383 = vrcp.f32 %v1417_v55  ;;  %v2372_v14 = vpop.eup %2371  ;;  %v3826_v11 = vld [vmem:[#allocation23_spill] sm:$0xff]  ;;  %2015 = vmatpush3.bf16.msra.mxu0 %v2139_v46 }
 0x1f0   : > { %v1369_v56 = vmul.f32 %v2364_v23, %v3822_v52  ;;  %v1404_v16 = vmul.f32 %v2368_v22, %v3316_v43  ;;  %v1340_v32 = vmul.f32 %v2368_v22, %v3440_v61  ;;  %v3824_v26 = vunpack.c.h.bf16 %v3817_v18  ;;  %v2374_v60 = vpop.eup %2373  ;;  %v3827_v61 = vld [vmem:[#allocation30_spill] sm:$0xff]  ;;  %2016 = vmatprep.subr.bf16.mxu0 %v2581_v44 }
 0x1f1   : > { %v1362_v59 = vmul.f32 %v3431_v28, %v3823_v5  ;;  %v3546_v17 = vmul.f32 %v3484_v62, %v1377_v57  ;;  %v3825_v28 = vld [vmem:[#allocation24_spill] sm:$0xff]  ;;  %v1402_v2 = vmul.f32 %v2372_v14, %v3342_v1  ;;  %v1338_v43 = vmul.f32 %v2372_v14, %v3452_v25  ;;  %v2376_v24 = vpop.eup %2375  ;;  %v3829_v62 = vld [vmem:[#allocation25_spill] sm:$0xff]  ;;  %v3831_v25 = vld [vmem:[#allocation31_spill] sm:$0xff] }
 0x1f2   : > { %v3541_v53 = vadd.f32 %v1369_v56, %v1337_v29  ;;  %v1372_v13 = vmul.f32 %v2370_v39, %v3824_v26  ;;  %v957_v9 = vmul.f32 %v3826_v11, %v3825_v28  ;;  %v1420_v48 = vadd.f32 %v2370_v39, %v1404_v16  ;;  %v2378_v0 = vpop.eup %2377  ;;  %v3835_v57 = vld [vmem:[#allocation27_spill] sm:$0xff]  ;;  %v3836_v39 = vld [vmem:[#allocation26_spill] sm:$0xff]  ;;  %v3842_v28 = vld [vmem:[#allocation28_spill] sm:$0xff] }
 0x1f3   : > { %v1378_v63 = vadd.f32 %v1362_v59, %v1330_v6  ;;  %v958_v36 = vmul.f32 %v3828_v40, %v3827_v61  ;;  %v1445_v47 = vmul.f32 %v2374_v60, %v3489_v30  ;;  %v1418_v12 = vadd.f32 %v2376_v24, %v1402_v2  ;;  %v3832_v30 = vld [vmem:[#allocation16_spill] sm:$0xff] }
 0x1f4   : > { %v1388_v18 = vadd.f32 %v1372_v13, %v1340_v32  ;;  %v1005_v29 = vadd.f32 %v3829_v62, %v957_v9  ;;  %2385 = vrcp.f32 %v1420_v48  ;;  %v3830_v1 = vunpack.c.h.bf16 %v3821_v54  ;;  %v3838_v32 = vld [vmem:[#allocation32_spill] sm:$0xff]  ;;  %v3839_v13 = vld [vmem:[#allocation15_spill] sm:$0xff]  ;;  %v3843_v9 = vld [vmem:[#allocation34_spill] sm:$0xff] }
 0x1f5   : > { %v1442_v51 = vmul.f32 %v2362_v37, %v1378_v63  ;;  %v1006_v35 = vadd.f32 %v3831_v25, %v958_v36  ;;  %v1448_v3 = vmul.f32 %v2378_v0, %v3487_v19  ;;  %v3833_v37 = vunpack.c.l.bf16 %v3832_v30  ;;  %v2380_v5 = vpop.eup %2379 }
 0x1f6   : > { %v1370_v23 = vmul.f32 %v2376_v24, %v3830_v1  ;;  %v1327_v52 = vmul.f32 %v3332_v50, %v1005_v29  ;;  %2387 = vrcp.f32 %v1418_v12  ;;  %v3834_v22 = vunpack.c.h.bf16 %v3832_v30  ;;  %v3837_v50 = vld [vmem:[#allocation33_spill] sm:$0xff] }
 0x1f7   : > { %v1456_v55 = vpack.c.bf16 %v1442_v51, %v3546_v17  ;;  %v1359_v56 = vmul.f32 %v3340_v42, %v3833_v37  ;;  %v1328_v46 = vmul.f32 %v3364_v27, %v1006_v35  ;;  %v1459_v59 = vpack.c.bf16 %v1448_v3, %v3531_v45 }
 0x1f8   : > { %v1386_v6 = vadd.f32 %v1370_v23, %v1338_v43  ;;  %v1360_v54 = vmul.f32 %v3369_v31, %v3834_v22  ;;  %v955_v16 = vmul.f32 %v3836_v39, %v3835_v57  ;;  %v956_v14 = vmul.f32 %v3838_v32, %v3837_v50 }
 0x1f9   : > { %v1375_v19 = vadd.f32 %v1359_v56, %v1327_v52  ;;  %v1446_v42 = vmul.f32 %v2380_v5, %v3512_v7  ;;  %v3840_v63 = vunpack.c.l.bf16 %v3839_v13  ;;  %v3841_v17 = vunpack.c.h.bf16 %v3839_v13 }
 0x1fa   : > { %v1376_v26 = vadd.f32 %v1360_v54, %v1328_v46  ;;  %v1003_v11 = vadd.f32 %v3842_v28, %v955_v16  ;;  %v1004_v60 = vadd.f32 %v3843_v9, %v956_v14 }
 0x1fb   : > { %v1357_v27 = vmul.f32 %v3353_v20, %v3840_v63  ;;  %v1358_v31 = vmul.f32 %v3377_v33, %v3841_v17  ;;  %v1439_v45 = vmul.f32 %v3407_v49, %v1375_v19  ;;  %v1458_v48 = vpack.c.bf16 %v1446_v42, %v1445_v47  ;;  %v2382_v7 = vpop.eup %2381 }
 0x1fc   : > { %v1440_v2 = vmul.f32 %v3444_v10, %v1376_v26  ;;  %v1325_v20 = vmul.f32 %v3347_v8, %v1003_v11  ;;  %v1326_v43 = vmul.f32 %v3375_v21, %v1004_v60  ;;  %v2384_v61 = vpop.eup %2383  ;;  %v1451_v51 = vmul.f32 %v2382_v7, %v3521_v4 }
 0x1fd   : > { %v1449_v12 = vmul.f32 %v2384_v61, %v3541_v53 }
 0x1fe   : > { %v1455_v33 = vpack.c.bf16 %v1440_v2, %v1439_v45  ;;  %v1373_v49 = vadd.f32 %v1357_v27, %v1325_v20  ;;  %v1374_v40 = vadd.f32 %v1358_v31, %v1326_v43 }
 0x200   : > { %v1437_v36 = vmul.f32 %v3417_v41, %v1373_v49  ;;  %v1438_v24 = vmul.f32 %v3458_v58, %v1374_v40  ;;  %v1453_v41 = vld [vmem:[%s2790_s20] sm:$0xf]  ;;  %v2140_v58 = vld [vmem:[#allocation8] sm:$0xff]  }
 0x201   : > { %v2386_v47 = vpop.eup %2385  ;;  %2017 = vmatpush3.bf16.msra.mxu0 %v2140_v58 }
 0x202   : > { %v1454_v10 = vpack.c.bf16 %v1438_v24, %v1437_v36  ;;  %v1452_v62 = vmul.f32 %v2386_v47, %v1388_v18 }
 0x203   : > { %v2388_v29 = vpop.eup %2387 }
 0x204   : > { %v1461_v0 = vpack.c.bf16 %v1452_v62, %v1451_v51  ;;  %v1450_v8 = vmul.f32 %v2388_v29, %v1386_v6 }
 0x206   : > { %1983 = vmatpush3.bf16.msra.mxu1 %v1461_v0  ;;  %v1460_v21 = vpack.c.bf16 %v1450_v8, %v1449_v12 }
 0x207   : > { %1984 = vmatprep.subr.bf16.mxu1 %v2581_v44 }
 0x20a   : > { %1985 = vmatpush3.bf16.msra.mxu1 %v1460_v21 }
 0x20b   : > { %1986 = vmatprep.subr.bf16.mxu1 %v2581_v44 }
 0x20e   : > { %1987 = vmatpush3.bf16.msra.mxu1 %v1459_v59 }
 0x20f   : > { %1988 = vmatprep.subr.bf16.mxu1 %v2581_v44 }
 0x212   : > { %1989 = vmatpush3.bf16.msra.mxu1 %v1458_v48 }
 0x213   : > { %1990 = vmatprep.subr.bf16.mxu1 %v2581_v44 }
 0x216   : > { %1991 = vmatpush3.bf16.msra.mxu1 %v1457_v38 }
 0x217   : > { %1992 = vmatprep.subr.bf16.mxu1 %v2581_v44 }
 0x21a   : > { %1993 = vmatpush3.bf16.msra.mxu1 %v1456_v55 }
 0x21b   : > { %1994 = vmatprep.subr.bf16.mxu1 %v2581_v44 }
 0x21e   : > { %1995 = vmatpush3.bf16.msra.mxu1 %v1455_v33 }
 0x21f   : > { %1996 = vmatprep.subr.bf16.mxu1 %v2581_v44 }
 0x222   : > { %1997 = vmatpush3.bf16.msra.mxu1 %v1454_v10 }
 0x225   : > { %1999 = vmatmul.mubr.bf16.vlgmr.msra.gmra.mxu1 %v1453_v41 }
 0x2e5   : > { %v1496_v4 = vpop.f32.mrf.mxu1 }
 0x2e6   : > { %v1502_v53 = vpack.c.bf16 %v1496_v4, %v1496_v4 }
 0x2e7   : > { %v2000_v34 = vpop.f32.mrf.mxu1 }
 0x2e8   : > { %2019 = vmatmul.mubr.bf16.vlgmr.msra.gmra.mxu0 %v1502_v53 }
 0x2e9   : > { %v1499_v15 = vpop.f32.mrf.mxu1 }
 0x2eb   : > { %v2001_v38 = vpop.f32.mrf.mxu1 }
 0x3a8   : > { %v1601_v44 = vpop.f32.mrf.mxu0 }
 0x3a9   : > { %1607 = vst [vmem:[%s278_s7] sm:$0xff] %v1601_v44 }
 0x3aa   : > { %v2020_v18 = vpop.f32.mrf.mxu0 }
 0x3ab   : > { %2510 = shalt.err (!%p2507_p13)
}
 0x3ac   : > { %s2511_s1 = scalar_lea.hbm %s3612_s30, 128  ;;  %s2515_s29 = scalar_lea.hbm %s3657_s4, 256 }
 0x3ad   : > { %p2512_p3 = scmp.ne.s32.totalorder %s3612_s30, %s2511_s1  ;;  %p2516_p11 = scmp.lt.s32.totalorder %s3612_s30, %s3657_s4 }
 0x3ae   : > { %p2517_p1 = scmp.lt.s32.totalorder %s2515_s29, %s2511_s1 }
 0x3af   : > { %p2513_p10 = pnand %p2512_p3, %p3844_p8 }
 0x3b0   : > { %p2518_p4 = por %p2517_p1, %p2516_p11 }
 0x3b1   : > { %p2514_p9 = pneg %p2513_p10 }
 0x3b3   : > { %p2519_p6 = pnand %p2518_p4, %p2514_p9 }
 0x3b5   : > { %2522 = shalt.err (!%p2519_p6)
}
 0x3b6   : > { %2037 = dma.vmem_to_hbm [thread:$0]  (%p3844_p8), %s3607_s24, 128, %s3612_s30, %s1609_s6   ;;  %v1604_v1 = vpop.f32.mrf.mxu0 }
 0x3b8   : > { %v2021_v23 = vpop.f32.mrf.mxu0 }
 0x3b9 PF: > { %s1634_s23 = sand.u32 1, %s2561_s15   ;;  %p3845_p12 = scmp.ne.s32.totalorder %s3695_s22, 0 }
 0x3ba   : > { %p3846_p7 = scmp.ge.s32.totalorder %s2573_s18, 2  ;;  %s1635_s20 = scalar_lea.sflag [#allocation4], %s1634_s23 }
 0x3bc   : > { %p2054_p0 = pnand %p3846_p7, %p3845_p12 }
 0x3be   : > { %p2055_p5 = pneg %p2054_p0 }
 0x3c0   : > { %2556 = dma.done.wait (%p2055_p5), %s1635_s20, 128  }
 0x3c1   : > { %2558 = vsyncadd (%p2055_p5), %s1635_s20, 4294967168  ;;  %p18_p8 = scmp.ge.s32.totalorder %s2663_s27, 4   ;;  %s3847_s15 = smov %s2565_s16 }
 0x3c2   : > { %s3848_s16 = smov %s2569_s17  ;;  %s3849_s17 = smov %s2686_s9 }
 0x3c3   : > { %s3850_s18 = smov %s2663_s27  ;;  %20 = sbr.rel (!%p18_p8) target bundleno = 9 (0x9), region = 102 }
 0x3c8   :  { %1640 = vsyncpa [#allocation3], 1 }
 0x3c9   :  { %1642 = vsyncpa [#allocation3 + $0x1], 1 }
 0x3ca   :  { %1643 = vsyncpa [#allocation6], 1 }
 0x3cb   :  { %1644 = vsyncpa [#allocation4], 1 }
 0x3cc   :  { %1646 = vsyncpa [#allocation4 + $0x1], 1 }

</bundles_post_ra>
